<compile_context>
chip_gen: v7x
topology: tpu7x:2x2x1
jax: 0.10.0
libtpu: 0.0.40
codegen_flags: <defaults>
</compile_context>

<pallas_src>
import jax
import jax.numpy as jnp
from jax import lax
from jax.experimental import pallas as pl
from jax.experimental.pallas import tpu as pltpu


def _make_encoder_gru_kernel(T, B, H, n_layers, num_dir):
    """Fused multi-layer bidirectional GRU kernel body (single grid point)."""
    DH = num_dir * H

    def kernel(*refs):
        # refs = [x_cat, h0, (W_x, W_h, b_x, b_hn) * n_layers, out, act_scratch]
        x_ref, h0_ref = refs[0], refs[1]
        w_refs = refs[2:2 + 4 * n_layers]
        out_ref = refs[2 + 4 * n_layers]
        act_scr = refs[3 + 4 * n_layers]

        for layer in range(n_layers):
            wx_ref, wh_ref, bx_ref, bhn_ref = w_refs[4 * layer:4 * layer + 4]
            if layer == 0:
                x_in = x_ref[...]                              # (T*B, D*E)  bf16
            else:
                x_in = act_scr[...].astype(jnp.bfloat16)       # (T*B, D*DH)
            dst = out_ref if layer == n_layers - 1 else act_scr

            # Hoisted input projection, fused over gates AND directions: one big
            # parallel MXU matmul; no x-matmuls left on the serial path.
            # Column layout: [ r_f r_b | z_f z_b | n_f n_b ].
            gx = jnp.dot(x_in, wx_ref[...],
                         preferred_element_type=jnp.float32) + bx_ref[...]   # (T*B, 3*DH)

            w_h = wh_ref[...]                              # (DH, 3DH) bf16, block-diag
            b_hn = jnp.broadcast_to(bhn_ref[...], (B, DH))  # hoisted out of the loop
            h = h0_ref[layer]                              # (B, DH) f32 = [h_fwd | h_bwd]

            # Serial recurrence: both directions advance together in one fused step —
            # a single (B,DH)@(DH,3DH) matmul + one set of gate ops per step.
            # Static Python loop -> all slices static (small-T regime).
            # TODO(synk): for long sequences, chunk T over a grid axis / fori_loop.
            for t in range(T):
                gh = jnp.dot(h.astype(jnp.bfloat16), w_h,
                             preferred_element_type=jnp.float32)             # (B, 3DH)
                gx_t = gx[t * B:(t + 1) * B, :]
                r = jax.nn.sigmoid(gx_t[:, 0:DH] + gh[:, 0:DH])
                z = jax.nn.sigmoid(gx_t[:, DH:2 * DH] + gh[:, DH:2 * DH])
                n = jnp.tanh(gx_t[:, 2 * DH:3 * DH] + r * (gh[:, 2 * DH:3 * DH] + b_hn))
                h = (1.0 - z) * n + z * h

                # fwd half is the hidden for absolute time t; bwd half for time T-1-t.
                dst[t * B:(t + 1) * B, 0:H] = h[:, 0:H].astype(dst.dtype)
                if num_dir == 2:
                    tb = T - 1 - t
                    dst[tb * B:(tb + 1) * B, H:2 * H] = h[:, H:2 * H].astype(dst.dtype)

            # The next layer's backward direction reads these activations in reverse
            # time order; write a row-reversed copy once (cheap parallel post-pass)
            # so the next layer keeps a single fused input projection.
            if layer != n_layers - 1 and num_dir == 2:
                for t in range(T):
                    tb = T - 1 - t
                    act_scr[t * B:(t + 1) * B, DH:2 * DH] = \
                        act_scr[tb * B:(tb + 1) * B, 0:DH]

    return kernel


def _pack_layer_params(w_ih, w_hh, b_ih, b_hh, in_dim, H, D):
    """Pack per-direction GRU weights into direction+gate fused, MXU-friendly operands.

    Output column layout (width 3*D*H): [ r_d0 r_d1 | z_d0 z_d1 | n_d0 n_d1 ].
    W_x is block-diagonal over directions in its input rows (the fused input row is
    [x(t) | x(T-1-t)]); W_h is block-diagonal over the fused state [h_fwd | h_bwd].
    """
    DH = D * H
    W_x = jnp.zeros((D * in_dim, 3 * DH), jnp.float32)
    W_h = jnp.zeros((DH, 3 * DH), jnp.float32)
    b_x = jnp.zeros((3 * DH,), jnp.float32)
    b_hn = jnp.zeros((DH,), jnp.float32)
    for d in range(D):
        for g in range(3):
            col = g * DH + d * H
            W_x = W_x.at[d * in_dim:(d + 1) * in_dim, col:col + H].set(
                w_ih[d, :, g * H:(g + 1) * H].astype(jnp.float32))
            W_h = W_h.at[d * H:(d + 1) * H, col:col + H].set(
                w_hh[d, :, g * H:(g + 1) * H].astype(jnp.float32))
            b = b_ih[d, g * H:(g + 1) * H]
            if g < 2:   # fold the r/z parts of b_hh into the hoisted projection
                b = b + b_hh[d, g * H:(g + 1) * H]
            b_x = b_x.at[col:col + H].set(b)
        b_hn = b_hn.at[d * H:(d + 1) * H].set(b_hh[d, 2 * H:3 * H])
    return (W_x.astype(jnp.bfloat16), W_h.astype(jnp.bfloat16),
            b_x[None, :], b_hn[None, :])


class EncoderPallas:
    def __init__(self, key, vocab_size, input_size, hidden_size, bidir, n_layers,
                 dropout=0.5, noise_radius=0.2):
        assert isinstance(bidir, bool)
        self.input_size = input_size
        self.hidden_size = hidden_size
        self.n_layers = n_layers
        self.bidir = bidir
        self.num_dir = 2 if bidir else 1
        self.dropout = dropout
        self.noise_radius = noise_radius

        H, D = hidden_size, self.num_dir
        keys = iter(jax.random.split(key, 2 + 4 * n_layers))

        # Deterministic synthetic parameters (stand-in for the trained PyTorch weights).
        self.embedding = (0.1 * jax.random.normal(
            next(keys), (vocab_size, input_size), jnp.float32)).astype(jnp.bfloat16)
        self.init_h = jax.random.normal(
            next(keys), (n_layers * D, 1, H), jnp.float32)

        self.layers = []          # raw per-direction params (pure-JAX reference uses these)
        self.kernel_params = []   # host-packed fused operands for the kernel
        for layer in range(n_layers):
            in_dim = input_size if layer == 0 else H * D
            w_ih = (0.3 * jax.random.normal(next(keys), (D, in_dim, 3 * H),
                                            jnp.float32)).astype(jnp.bfloat16)
            w_hh = (0.3 * jax.random.normal(next(keys), (D, H, 3 * H),
                                            jnp.float32)).astype(jnp.bfloat16)
            b_ih = 0.1 * jax.random.normal(next(keys), (D, 3 * H), jnp.float32)
            b_hh = 0.1 * jax.random.normal(next(keys), (D, 3 * H), jnp.float32)
            self.layers.append((w_ih, w_hh, b_ih, b_hh))
            self.kernel_params.append(
                _pack_layer_params(w_ih, w_hh, b_ih, b_hh, in_dim, H, D))

    def forward(self, token_ids):
        B, T = token_ids.shape
        H, D = self.hidden_size, self.num_dir
        DH = D * H
        E = self.input_size

        # Embedding lookup (glue). F.dropout(p, training=False) -> identity.
        x = jnp.take(self.embedding, token_ids, axis=0)              # (B, T, E) bf16
        x_tm = jnp.transpose(x, (1, 0, 2))                            # (T, B, E)
        if D == 2:
            # Fused layer-0 input: row t = [x(t) | x(T-1-t)] so fwd/bwd share one matmul.
            x_cat = jnp.concatenate([x_tm, x_tm[::-1]], axis=-1)     # (T, B, 2E)
        else:
            x_cat = x_tm
        x_cat = x_cat.reshape(T * B, D * E)

        # Learned init_h, fused per layer as [h0_fwd | h0_bwd].
        h0 = jnp.broadcast_to(
            self.init_h, (self.n_layers * D, B, H)).astype(jnp.float32)
        h0 = h0.reshape(self.n_layers, D, B, H).transpose(0, 2, 1, 3)
        h0 = h0.reshape(self.n_layers, B, DH)

        flat_w = []
        for p in self.kernel_params:
            flat_w.extend(p)
        inputs = [x_cat, h0] + flat_w

        def full_spec(shape):
            nd = len(shape)
            return pl.BlockSpec(shape, lambda i, nd=nd: (0,) * nd)

        kernel = _make_encoder_gru_kernel(T, B, H, self.n_layers, D)
        out = pl.pallas_call(
            kernel,
            out_shape=jax.ShapeDtypeStruct((T * B, DH), jnp.float32),
            grid_spec=pltpu.PrefetchScalarGridSpec(
                num_scalar_prefetch=0,
                grid=(1,),  # single grid point: entire GRU fused, everything VMEM-resident
                in_specs=[full_spec(a.shape) for a in inputs],
                out_specs=full_spec((T * B, DH)),
                # inter-layer activations: [natural | time-reversed] halves
                scratch_shapes=[pltpu.VMEM((T * B, D * DH), jnp.float32)],
            ),
            compiler_params=pltpu.CompilerParams(
                dimension_semantics=("arbitrary",)),
        )(*inputs)

        hids = out.reshape(T, B, DH).transpose(1, 0, 2)               # (B, T, D*H)
        # enc = h_n of last layer: [fwd final (t=T-1), bwd final (t=0)]
        if self.bidir:
            enc = jnp.concatenate([hids[:, T - 1, :H], hids[:, 0, H:]], axis=-1)
        else:
            enc = hids[:, T - 1, :]
        # TODO(synk): input_lens sort/pack_padded_sequence path not implemented (input_lens=None only).
        # TODO(synk): noise=True Gaussian perturbation branch omitted (default noise=False).
        # TODO(synk): on v7x the two directions / megacore split via core_map could go further.
        return enc, hids


# ---------------- pure-JAX reference (lax.scan GRU) for validation ----------------
def _gru_ref_layer_dir(x_tbe, h0, w_ih, w_hh, b_ih, b_hh, reverse):
    """Plain-JAX GRU (PyTorch gate math) mirroring the kernel's bf16 operand-cast policy."""
    H = h0.shape[-1]
    w_ih = w_ih.astype(jnp.float32)
    w_hh = w_hh.astype(jnp.float32)
    xs = x_tbe[::-1] if reverse else x_tbe
    xs = xs.astype(jnp.bfloat16).astype(jnp.float32)

    def step(h, x):
        gx = x @ w_ih + b_ih
        gh = h.astype(jnp.bfloat16).astype(jnp.float32) @ w_hh + b_hh
        r = jax.nn.sigmoid(gx[:, :H] + gh[:, :H])
        z = jax.nn.sigmoid(gx[:, H:2 * H] + gh[:, H:2 * H])
        n = jnp.tanh(gx[:, 2 * H:] + r * gh[:, 2 * H:])
        h_new = (1.0 - z) * n + z * h
        return h_new, h_new

    _, ys = lax.scan(step, h0, xs)
    return ys[::-1] if reverse else ys


def encoder_ref(model, token_ids):
    B, T = token_ids.shape
    H, D = model.hidden_size, model.num_dir
    x = jnp.take(model.embedding, token_ids, axis=0).astype(jnp.float32)
    layer_in = jnp.transpose(x, (1, 0, 2))                            # (T, B, E)
    h0 = jnp.broadcast_to(
        model.init_h, (model.n_layers * D, B, H)).astype(jnp.float32)
    last = None
    for layer, (w_ih, w_hh, b_ih, b_hh) in enumerate(model.layers):
        outs = []
        for d in range(D):
            outs.append(_gru_ref_layer_dir(layer_in, h0[layer * D + d],
                                           w_ih[d], w_hh[d], b_ih[d], b_hh[d],
                                           reverse=(d == 1)))
        layer_in = jnp.concatenate(outs, axis=-1)
        last = outs
    hids = jnp.transpose(layer_in, (1, 0, 2))
    h_last = [last[0][T - 1]] + ([last[1][0]] if model.bidir else [])
    enc = jnp.concatenate(h_last, axis=-1)
    return enc, hids


if __name__ == "__main__":
    key = jax.random.PRNGKey(0)
    k_params, k_tokens = jax.random.split(key)

    vocab_size, emb_size, hidden_size = 32, 16, 32
    n_layers, bidir = 2, True
    batch, seq_len = 2, 8

    model = EncoderPallas(k_params, vocab_size, emb_size, hidden_size,
                          bidir=bidir, n_layers=n_layers)
    tokens = jax.random.randint(k_tokens, (batch, seq_len), 0, vocab_size,
                                dtype=jnp.int32)

    enc, hids = model.forward(tokens)
    jax.block_until_ready((enc, hids))

    enc_ref, hids_ref = encoder_ref(model, tokens)
    num_dir = 2 if bidir else 1
    assert enc.shape == (batch, num_dir * hidden_size)
    assert hids.shape == (batch, seq_len, num_dir * hidden_size)
    assert jnp.allclose(enc, enc_ref, atol=1e-2, rtol=1e-2), \
        float(jnp.max(jnp.abs(enc - enc_ref)))
    assert jnp.allclose(hids, hids_ref, atol=1e-2, rtol=1e-2), \
        float(jnp.max(jnp.abs(hids - hids_ref)))

    print("KERNEL_OK")
</pallas_src>

<mosaic_0001>
module attributes {stable_mosaic.version = 11 : i64} {
  func.func @kernel(%arg0: i32, %arg1: memref<16x32xbf16, #tpu.memory_space<vmem>>, %arg2: memref<2x2x64xf32, #tpu.memory_space<vmem>>, %arg3: memref<32x192xbf16, #tpu.memory_space<vmem>>, %arg4: memref<64x192xbf16, #tpu.memory_space<vmem>>, %arg5: memref<1x192xf32, #tpu.memory_space<vmem>>, %arg6: memref<1x64xf32, #tpu.memory_space<vmem>>, %arg7: memref<128x192xbf16, #tpu.memory_space<vmem>>, %arg8: memref<64x192xbf16, #tpu.memory_space<vmem>>, %arg9: memref<1x192xf32, #tpu.memory_space<vmem>>, %arg10: memref<1x64xf32, #tpu.memory_space<vmem>>, %arg11: memref<16x64xf32, #tpu.memory_space<vmem>>, %arg12: memref<16x128xf32, #tpu.memory_space<vmem>>) attributes {dimension_semantics = [#tpu.dimension_semantics<arbitrary>], iteration_bounds = array<i64: 1>, scalar_prefetch = 0 : i64, scratch_operands = 1 : i64, tpu.core_type = #tpu.core_type<tc>, window_params = [{pipeline_mode = #tpu.pipeline_mode<synchronous>, transform_indices = @transform_0, window_bounds = array<i64: 16, 32>}, {pipeline_mode = #tpu.pipeline_mode<synchronous>, transform_indices = @transform_1, window_bounds = array<i64: 2, 2, 64>}, {pipeline_mode = #tpu.pipeline_mode<synchronous>, transform_indices = @transform_2, window_bounds = array<i64: 32, 192>}, {pipeline_mode = #tpu.pipeline_mode<synchronous>, transform_indices = @transform_3, window_bounds = array<i64: 64, 192>}, {pipeline_mode = #tpu.pipeline_mode<synchronous>, transform_indices = @transform_4, window_bounds = array<i64: 1, 192>}, {pipeline_mode = #tpu.pipeline_mode<synchronous>, transform_indices = @transform_5, window_bounds = array<i64: 1, 64>}, {pipeline_mode = #tpu.pipeline_mode<synchronous>, transform_indices = @transform_6, window_bounds = array<i64: 128, 192>}, {pipeline_mode = #tpu.pipeline_mode<synchronous>, transform_indices = @transform_7, window_bounds = array<i64: 64, 192>}, {pipeline_mode = #tpu.pipeline_mode<synchronous>, transform_indices = @transform_8, window_bounds = array<i64: 1, 192>}, {pipeline_mode = #tpu.pipeline_mode<synchronous>, transform_indices = @transform_9, window_bounds = array<i64: 1, 64>}, {pipeline_mode = #tpu.pipeline_mode<synchronous>, transform_indices = @transform_10, window_bounds = array<i64: 16, 64>}]} {
    %c0 = arith.constant 0 : index
    %c0_0 = arith.constant 0 : index
    %0 = vector.load %arg1[%c0, %c0_0] : memref<16x32xbf16, #tpu.memory_space<vmem>>, vector<16x32xbf16>
    %c0_1 = arith.constant 0 : index
    %c0_2 = arith.constant 0 : index
    %1 = vector.load %arg3[%c0_1, %c0_2] : memref<32x192xbf16, #tpu.memory_space<vmem>>, vector<32x192xbf16>
    %cst = arith.constant dense<0.000000e+00> : vector<16x192xf32>
    %2 = tpu.matmul %0, %1, %cst {dimension_numbers = #tpu.dot_dimension_numbers<[1], [0], [0], [1], [0, 0, 1, 1], [], []>} : vector<16x32xbf16>, vector<32x192xbf16>, vector<16x192xf32> -> vector<16x192xf32>
    %c0_3 = arith.constant 0 : index
    %c0_4 = arith.constant 0 : index
    %3 = vector.load %arg5[%c0_3, %c0_4] : memref<1x192xf32, #tpu.memory_space<vmem>>, vector<1x192xf32>
    %4 = vector.broadcast %3 : vector<1x192xf32> to vector<16x192xf32>
    %5 = arith.addf %2, %4 : vector<16x192xf32>
    %c0_5 = arith.constant 0 : index
    %c0_6 = arith.constant 0 : index
    %6 = vector.load %arg4[%c0_5, %c0_6] : memref<64x192xbf16, #tpu.memory_space<vmem>>, vector<64x192xbf16>
    %c0_7 = arith.constant 0 : index
    %c0_8 = arith.constant 0 : index
    %7 = vector.load %arg6[%c0_7, %c0_8] : memref<1x64xf32, #tpu.memory_space<vmem>>, vector<1x64xf32>
    %8 = vector.shape_cast %7 : vector<1x64xf32> to vector<1x64xf32>
    %9 = vector.broadcast %8 : vector<1x64xf32> to vector<2x64xf32>
    %c0_9 = arith.constant 0 : index
    %c0_10 = arith.constant 0 : index
    %c0_11 = arith.constant 0 : index
    %10 = vector.load %arg2[%c0_9, %c0_10, %c0_11] : memref<2x2x64xf32, #tpu.memory_space<vmem>>, vector<1x2x64xf32>
    %11 = vector.shape_cast %10 : vector<1x2x64xf32> to vector<2x64xf32>
    %12 = arith.truncf %11 : vector<2x64xf32> to vector<2x64xbf16>
    %cst_12 = arith.constant dense<0.000000e+00> : vector<2x192xf32>
    %13 = tpu.matmul %12, %6, %cst_12 {dimension_numbers = #tpu.dot_dimension_numbers<[1], [0], [0], [1], [0, 0, 1, 1], [], []>} : vector<2x64xbf16>, vector<64x192xbf16>, vector<2x192xf32> -> vector<2x192xf32>
    %14 = vector.extract_strided_slice %5 {offsets = [0, 0], sizes = [2, 192], strides = [1, 1]} : vector<16x192xf32> to vector<2x192xf32>
    %15 = vector.extract_strided_slice %14 {offsets = [0, 0], sizes = [2, 64], strides = [1, 1]} : vector<2x192xf32> to vector<2x64xf32>
    %16 = vector.extract_strided_slice %13 {offsets = [0, 0], sizes = [2, 64], strides = [1, 1]} : vector<2x192xf32> to vector<2x64xf32>
    %17 = arith.addf %15, %16 : vector<2x64xf32>
    %18 = arith.negf %17 : vector<2x64xf32>
    %19 = math.exp %18 : vector<2x64xf32>
    %cst_13 = arith.constant 1.000000e+00 : f32
    %20 = vector.broadcast %cst_13 : f32 to vector<2x64xf32>
    %21 = arith.addf %20, %19 : vector<2x64xf32>
    %22 = arith.divf %20, %21 : vector<2x64xf32>
    %23 = vector.extract_strided_slice %14 {offsets = [0, 64], sizes = [2, 64], strides = [1, 1]} : vector<2x192xf32> to vector<2x64xf32>
    %24 = vector.extract_strided_slice %13 {offsets = [0, 64], sizes = [2, 64], strides = [1, 1]} : vector<2x192xf32> to vector<2x64xf32>
    %25 = arith.addf %23, %24 : vector<2x64xf32>
    %26 = arith.negf %25 : vector<2x64xf32>
    %27 = math.exp %26 : vector<2x64xf32>
    %cst_14 = arith.constant 1.000000e+00 : f32
    %28 = vector.broadcast %cst_14 : f32 to vector<2x64xf32>
    %29 = arith.addf %28, %27 : vector<2x64xf32>
    %30 = arith.divf %28, %29 : vector<2x64xf32>
    %31 = vector.extract_strided_slice %14 {offsets = [0, 128], sizes = [2, 64], strides = [1, 1]} : vector<2x192xf32> to vector<2x64xf32>
    %32 = vector.extract_strided_slice %13 {offsets = [0, 128], sizes = [2, 64], strides = [1, 1]} : vector<2x192xf32> to vector<2x64xf32>
    %33 = arith.addf %32, %9 : vector<2x64xf32>
    %34 = arith.mulf %22, %33 : vector<2x64xf32>
    %35 = arith.addf %31, %34 : vector<2x64xf32>
    %36 = math.tanh %35 : vector<2x64xf32>
    %cst_15 = arith.constant 1.000000e+00 : f32
    %37 = vector.broadcast %cst_15 : f32 to vector<2x64xf32>
    %38 = arith.subf %37, %30 : vector<2x64xf32>
    %39 = arith.mulf %38, %36 : vector<2x64xf32>
    %40 = arith.mulf %30, %11 : vector<2x64xf32>
    %41 = arith.addf %39, %40 : vector<2x64xf32>
    %42 = vector.extract_strided_slice %41 {offsets = [0, 0], sizes = [2, 32], strides = [1, 1]} : vector<2x64xf32> to vector<2x32xf32>
    %c0_16 = arith.constant 0 : index
    %c0_17 = arith.constant 0 : index
    %43 = vector.load %arg12[%c0_16, %c0_17] : memref<16x128xf32, #tpu.memory_space<vmem>>, vector<2x32xf32>
    tpu.vector_store %arg12[%c0_16, %c0_17], %42 {strides = array<i32>} : memref<16x128xf32, #tpu.memory_space<vmem>>, vector<2x32xf32>,
    %44 = vector.extract_strided_slice %41 {offsets = [0, 32], sizes = [2, 32], strides = [1, 1]} : vector<2x64xf32> to vector<2x32xf32>
    %c14 = arith.constant 14 : index
    %c32 = arith.constant 32 : index
    %45 = vector.load %arg12[%c14, %c32] : memref<16x128xf32, #tpu.memory_space<vmem>>, vector<2x32xf32>
    tpu.vector_store %arg12[%c14, %c32], %44 {strides = array<i32>} : memref<16x128xf32, #tpu.memory_space<vmem>>, vector<2x32xf32>,
    %46 = arith.truncf %41 : vector<2x64xf32> to vector<2x64xbf16>
    %cst_18 = arith.constant dense<0.000000e+00> : vector<2x192xf32>
    %47 = tpu.matmul %46, %6, %cst_18 {dimension_numbers = #tpu.dot_dimension_numbers<[1], [0], [0], [1], [0, 0, 1, 1], [], []>} : vector<2x64xbf16>, vector<64x192xbf16>, vector<2x192xf32> -> vector<2x192xf32>
    %48 = vector.extract_strided_slice %5 {offsets = [2, 0], sizes = [2, 192], strides = [1, 1]} : vector<16x192xf32> to vector<2x192xf32>
    %49 = vector.extract_strided_slice %48 {offsets = [0, 0], sizes = [2, 64], strides = [1, 1]} : vector<2x192xf32> to vector<2x64xf32>
    %50 = vector.extract_strided_slice %47 {offsets = [0, 0], sizes = [2, 64], strides = [1, 1]} : vector<2x192xf32> to vector<2x64xf32>
    %51 = arith.addf %49, %50 : vector<2x64xf32>
    %52 = arith.negf %51 : vector<2x64xf32>
    %53 = math.exp %52 : vector<2x64xf32>
    %cst_19 = arith.constant 1.000000e+00 : f32
    %54 = vector.broadcast %cst_19 : f32 to vector<2x64xf32>
    %55 = arith.addf %54, %53 : vector<2x64xf32>
    %56 = arith.divf %54, %55 : vector<2x64xf32>
    %57 = vector.extract_strided_slice %48 {offsets = [0, 64], sizes = [2, 64], strides = [1, 1]} : vector<2x192xf32> to vector<2x64xf32>
    %58 = vector.extract_strided_slice %47 {offsets = [0, 64], sizes = [2, 64], strides = [1, 1]} : vector<2x192xf32> to vector<2x64xf32>
    %59 = arith.addf %57, %58 : vector<2x64xf32>
    %60 = arith.negf %59 : vector<2x64xf32>
    %61 = math.exp %60 : vector<2x64xf32>
    %cst_20 = arith.constant 1.000000e+00 : f32
    %62 = vector.broadcast %cst_20 : f32 to vector<2x64xf32>
    %63 = arith.addf %62, %61 : vector<2x64xf32>
    %64 = arith.divf %62, %63 : vector<2x64xf32>
    %65 = vector.extract_strided_slice %48 {offsets = [0, 128], sizes = [2, 64], strides = [1, 1]} : vector<2x192xf32> to vector<2x64xf32>
    %66 = vector.extract_strided_slice %47 {offsets = [0, 128], sizes = [2, 64], strides = [1, 1]} : vector<2x192xf32> to vector<2x64xf32>
    %67 = arith.addf %66, %9 : vector<2x64xf32>
    %68 = arith.mulf %56, %67 : vector<2x64xf32>
    %69 = arith.addf %65, %68 : vector<2x64xf32>
    %70 = math.tanh %69 : vector<2x64xf32>
    %cst_21 = arith.constant 1.000000e+00 : f32
    %71 = vector.broadcast %cst_21 : f32 to vector<2x64xf32>
    %72 = arith.subf %71, %64 : vector<2x64xf32>
    %73 = arith.mulf %72, %70 : vector<2x64xf32>
    %74 = arith.mulf %64, %41 : vector<2x64xf32>
    %75 = arith.addf %73, %74 : vector<2x64xf32>
    %76 = vector.extract_strided_slice %75 {offsets = [0, 0], sizes = [2, 32], strides = [1, 1]} : vector<2x64xf32> to vector<2x32xf32>
    %c2 = arith.constant 2 : index
    %c0_22 = arith.constant 0 : index
    %77 = vector.load %arg12[%c2, %c0_22] : memref<16x128xf32, #tpu.memory_space<vmem>>, vector<2x32xf32>
    tpu.vector_store %arg12[%c2, %c0_22], %76 {strides = array<i32>} : memref<16x128xf32, #tpu.memory_space<vmem>>, vector<2x32xf32>,
    %78 = vector.extract_strided_slice %75 {offsets = [0, 32], sizes = [2, 32], strides = [1, 1]} : vector<2x64xf32> to vector<2x32xf32>
    %c12 = arith.constant 12 : index
    %c32_23 = arith.constant 32 : index
    %79 = vector.load %arg12[%c12, %c32_23] : memref<16x128xf32, #tpu.memory_space<vmem>>, vector<2x32xf32>
    tpu.vector_store %arg12[%c12, %c32_23], %78 {strides = array<i32>} : memref<16x128xf32, #tpu.memory_space<vmem>>, vector<2x32xf32>,
    %80 = arith.truncf %75 : vector<2x64xf32> to vector<2x64xbf16>
    %cst_24 = arith.constant dense<0.000000e+00> : vector<2x192xf32>
    %81 = tpu.matmul %80, %6, %cst_24 {dimension_numbers = #tpu.dot_dimension_numbers<[1], [0], [0], [1], [0, 0, 1, 1], [], []>} : vector<2x64xbf16>, vector<64x192xbf16>, vector<2x192xf32> -> vector<2x192xf32>
    %82 = vector.extract_strided_slice %5 {offsets = [4, 0], sizes = [2, 192], strides = [1, 1]} : vector<16x192xf32> to vector<2x192xf32>
    %83 = vector.extract_strided_slice %82 {offsets = [0, 0], sizes = [2, 64], strides = [1, 1]} : vector<2x192xf32> to vector<2x64xf32>
    %84 = vector.extract_strided_slice %81 {offsets = [0, 0], sizes = [2, 64], strides = [1, 1]} : vector<2x192xf32> to vector<2x64xf32>
    %85 = arith.addf %83, %84 : vector<2x64xf32>
    %86 = arith.negf %85 : vector<2x64xf32>
    %87 = math.exp %86 : vector<2x64xf32>
    %cst_25 = arith.constant 1.000000e+00 : f32
    %88 = vector.broadcast %cst_25 : f32 to vector<2x64xf32>
    %89 = arith.addf %88, %87 : vector<2x64xf32>
    %90 = arith.divf %88, %89 : vector<2x64xf32>
    %91 = vector.extract_strided_slice %82 {offsets = [0, 64], sizes = [2, 64], strides = [1, 1]} : vector<2x192xf32> to vector<2x64xf32>
    %92 = vector.extract_strided_slice %81 {offsets = [0, 64], sizes = [2, 64], strides = [1, 1]} : vector<2x192xf32> to vector<2x64xf32>
    %93 = arith.addf %91, %92 : vector<2x64xf32>
    %94 = arith.negf %93 : vector<2x64xf32>
    %95 = math.exp %94 : vector<2x64xf32>
    %cst_26 = arith.constant 1.000000e+00 : f32
    %96 = vector.broadcast %cst_26 : f32 to vector<2x64xf32>
    %97 = arith.addf %96, %95 : vector<2x64xf32>
    %98 = arith.divf %96, %97 : vector<2x64xf32>
    %99 = vector.extract_strided_slice %82 {offsets = [0, 128], sizes = [2, 64], strides = [1, 1]} : vector<2x192xf32> to vector<2x64xf32>
    %100 = vector.extract_strided_slice %81 {offsets = [0, 128], sizes = [2, 64], strides = [1, 1]} : vector<2x192xf32> to vector<2x64xf32>
    %101 = arith.addf %100, %9 : vector<2x64xf32>
    %102 = arith.mulf %90, %101 : vector<2x64xf32>
    %103 = arith.addf %99, %102 : vector<2x64xf32>
    %104 = math.tanh %103 : vector<2x64xf32>
    %cst_27 = arith.constant 1.000000e+00 : f32
    %105 = vector.broadcast %cst_27 : f32 to vector<2x64xf32>
    %106 = arith.subf %105, %98 : vector<2x64xf32>
    %107 = arith.mulf %106, %104 : vector<2x64xf32>
    %108 = arith.mulf %98, %75 : vector<2x64xf32>
    %109 = arith.addf %107, %108 : vector<2x64xf32>
    %110 = vector.extract_strided_slice %109 {offsets = [0, 0], sizes = [2, 32], strides = [1, 1]} : vector<2x64xf32> to vector<2x32xf32>
    %c4 = arith.constant 4 : index
    %c0_28 = arith.constant 0 : index
    %111 = vector.load %arg12[%c4, %c0_28] : memref<16x128xf32, #tpu.memory_space<vmem>>, vector<2x32xf32>
    tpu.vector_store %arg12[%c4, %c0_28], %110 {strides = array<i32>} : memref<16x128xf32, #tpu.memory_space<vmem>>, vector<2x32xf32>,
    %112 = vector.extract_strided_slice %109 {offsets = [0, 32], sizes = [2, 32], strides = [1, 1]} : vector<2x64xf32> to vector<2x32xf32>
    %c10 = arith.constant 10 : index
    %c32_29 = arith.constant 32 : index
    %113 = vector.load %arg12[%c10, %c32_29] : memref<16x128xf32, #tpu.memory_space<vmem>>, vector<2x32xf32>
    tpu.vector_store %arg12[%c10, %c32_29], %112 {strides = array<i32>} : memref<16x128xf32, #tpu.memory_space<vmem>>, vector<2x32xf32>,
    %114 = arith.truncf %109 : vector<2x64xf32> to vector<2x64xbf16>
    %cst_30 = arith.constant dense<0.000000e+00> : vector<2x192xf32>
    %115 = tpu.matmul %114, %6, %cst_30 {dimension_numbers = #tpu.dot_dimension_numbers<[1], [0], [0], [1], [0, 0, 1, 1], [], []>} : vector<2x64xbf16>, vector<64x192xbf16>, vector<2x192xf32> -> vector<2x192xf32>
    %116 = vector.extract_strided_slice %5 {offsets = [6, 0], sizes = [2, 192], strides = [1, 1]} : vector<16x192xf32> to vector<2x192xf32>
    %117 = vector.extract_strided_slice %116 {offsets = [0, 0], sizes = [2, 64], strides = [1, 1]} : vector<2x192xf32> to vector<2x64xf32>
    %118 = vector.extract_strided_slice %115 {offsets = [0, 0], sizes = [2, 64], strides = [1, 1]} : vector<2x192xf32> to vector<2x64xf32>
    %119 = arith.addf %117, %118 : vector<2x64xf32>
    %120 = arith.negf %119 : vector<2x64xf32>
    %121 = math.exp %120 : vector<2x64xf32>
    %cst_31 = arith.constant 1.000000e+00 : f32
    %122 = vector.broadcast %cst_31 : f32 to vector<2x64xf32>
    %123 = arith.addf %122, %121 : vector<2x64xf32>
    %124 = arith.divf %122, %123 : vector<2x64xf32>
    %125 = vector.extract_strided_slice %116 {offsets = [0, 64], sizes = [2, 64], strides = [1, 1]} : vector<2x192xf32> to vector<2x64xf32>
    %126 = vector.extract_strided_slice %115 {offsets = [0, 64], sizes = [2, 64], strides = [1, 1]} : vector<2x192xf32> to vector<2x64xf32>
    %127 = arith.addf %125, %126 : vector<2x64xf32>
    %128 = arith.negf %127 : vector<2x64xf32>
    %129 = math.exp %128 : vector<2x64xf32>
    %cst_32 = arith.constant 1.000000e+00 : f32
    %130 = vector.broadcast %cst_32 : f32 to vector<2x64xf32>
    %131 = arith.addf %130, %129 : vector<2x64xf32>
    %132 = arith.divf %130, %131 : vector<2x64xf32>
    %133 = vector.extract_strided_slice %116 {offsets = [0, 128], sizes = [2, 64], strides = [1, 1]} : vector<2x192xf32> to vector<2x64xf32>
    %134 = vector.extract_strided_slice %115 {offsets = [0, 128], sizes = [2, 64], strides = [1, 1]} : vector<2x192xf32> to vector<2x64xf32>
    %135 = arith.addf %134, %9 : vector<2x64xf32>
    %136 = arith.mulf %124, %135 : vector<2x64xf32>
    %137 = arith.addf %133, %136 : vector<2x64xf32>
    %138 = math.tanh %137 : vector<2x64xf32>
    %cst_33 = arith.constant 1.000000e+00 : f32
    %139 = vector.broadcast %cst_33 : f32 to vector<2x64xf32>
    %140 = arith.subf %139, %132 : vector<2x64xf32>
    %141 = arith.mulf %140, %138 : vector<2x64xf32>
    %142 = arith.mulf %132, %109 : vector<2x64xf32>
    %143 = arith.addf %141, %142 : vector<2x64xf32>
    %144 = vector.extract_strided_slice %143 {offsets = [0, 0], sizes = [2, 32], strides = [1, 1]} : vector<2x64xf32> to vector<2x32xf32>
    %c6 = arith.constant 6 : index
    %c0_34 = arith.constant 0 : index
    %145 = vector.load %arg12[%c6, %c0_34] : memref<16x128xf32, #tpu.memory_space<vmem>>, vector<2x32xf32>
    tpu.vector_store %arg12[%c6, %c0_34], %144 {strides = array<i32>} : memref<16x128xf32, #tpu.memory_space<vmem>>, vector<2x32xf32>,
    %146 = vector.extract_strided_slice %143 {offsets = [0, 32], sizes = [2, 32], strides = [1, 1]} : vector<2x64xf32> to vector<2x32xf32>
    %c8 = arith.constant 8 : index
    %c32_35 = arith.constant 32 : index
    %147 = vector.load %arg12[%c8, %c32_35] : memref<16x128xf32, #tpu.memory_space<vmem>>, vector<2x32xf32>
    tpu.vector_store %arg12[%c8, %c32_35], %146 {strides = array<i32>} : memref<16x128xf32, #tpu.memory_space<vmem>>, vector<2x32xf32>,
    %148 = arith.truncf %143 : vector<2x64xf32> to vector<2x64xbf16>
    %cst_36 = arith.constant dense<0.000000e+00> : vector<2x192xf32>
    %149 = tpu.matmul %148, %6, %cst_36 {dimension_numbers = #tpu.dot_dimension_numbers<[1], [0], [0], [1], [0, 0, 1, 1], [], []>} : vector<2x64xbf16>, vector<64x192xbf16>, vector<2x192xf32> -> vector<2x192xf32>
    %150 = vector.extract_strided_slice %5 {offsets = [8, 0], sizes = [2, 192], strides = [1, 1]} : vector<16x192xf32> to vector<2x192xf32>
    %151 = vector.extract_strided_slice %150 {offsets = [0, 0], sizes = [2, 64], strides = [1, 1]} : vector<2x192xf32> to vector<2x64xf32>
    %152 = vector.extract_strided_slice %149 {offsets = [0, 0], sizes = [2, 64], strides = [1, 1]} : vector<2x192xf32> to vector<2x64xf32>
    %153 = arith.addf %151, %152 : vector<2x64xf32>
    %154 = arith.negf %153 : vector<2x64xf32>
    %155 = math.exp %154 : vector<2x64xf32>
    %cst_37 = arith.constant 1.000000e+00 : f32
    %156 = vector.broadcast %cst_37 : f32 to vector<2x64xf32>
    %157 = arith.addf %156, %155 : vector<2x64xf32>
    %158 = arith.divf %156, %157 : vector<2x64xf32>
    %159 = vector.extract_strided_slice %150 {offsets = [0, 64], sizes = [2, 64], strides = [1, 1]} : vector<2x192xf32> to vector<2x64xf32>
    %160 = vector.extract_strided_slice %149 {offsets = [0, 64], sizes = [2, 64], strides = [1, 1]} : vector<2x192xf32> to vector<2x64xf32>
    %161 = arith.addf %159, %160 : vector<2x64xf32>
    %162 = arith.negf %161 : vector<2x64xf32>
    %163 = math.exp %162 : vector<2x64xf32>
    %cst_38 = arith.constant 1.000000e+00 : f32
    %164 = vector.broadcast %cst_38 : f32 to vector<2x64xf32>
    %165 = arith.addf %164, %163 : vector<2x64xf32>
    %166 = arith.divf %164, %165 : vector<2x64xf32>
    %167 = vector.extract_strided_slice %150 {offsets = [0, 128], sizes = [2, 64], strides = [1, 1]} : vector<2x192xf32> to vector<2x64xf32>
    %168 = vector.extract_strided_slice %149 {offsets = [0, 128], sizes = [2, 64], strides = [1, 1]} : vector<2x192xf32> to vector<2x64xf32>
    %169 = arith.addf %168, %9 : vector<2x64xf32>
    %170 = arith.mulf %158, %169 : vector<2x64xf32>
    %171 = arith.addf %167, %170 : vector<2x64xf32>
    %172 = math.tanh %171 : vector<2x64xf32>
    %cst_39 = arith.constant 1.000000e+00 : f32
    %173 = vector.broadcast %cst_39 : f32 to vector<2x64xf32>
    %174 = arith.subf %173, %166 : vector<2x64xf32>
    %175 = arith.mulf %174, %172 : vector<2x64xf32>
    %176 = arith.mulf %166, %143 : vector<2x64xf32>
    %177 = arith.addf %175, %176 : vector<2x64xf32>
    %178 = vector.extract_strided_slice %177 {offsets = [0, 0], sizes = [2, 32], strides = [1, 1]} : vector<2x64xf32> to vector<2x32xf32>
    %c8_40 = arith.constant 8 : index
    %c0_41 = arith.constant 0 : index
    %179 = vector.load %arg12[%c8_40, %c0_41] : memref<16x128xf32, #tpu.memory_space<vmem>>, vector<2x32xf32>
    tpu.vector_store %arg12[%c8_40, %c0_41], %178 {strides = array<i32>} : memref<16x128xf32, #tpu.memory_space<vmem>>, vector<2x32xf32>,
    %180 = vector.extract_strided_slice %177 {offsets = [0, 32], sizes = [2, 32], strides = [1, 1]} : vector<2x64xf32> to vector<2x32xf32>
    %c6_42 = arith.constant 6 : index
    %c32_43 = arith.constant 32 : index
    %181 = vector.load %arg12[%c6_42, %c32_43] : memref<16x128xf32, #tpu.memory_space<vmem>>, vector<2x32xf32>
    tpu.vector_store %arg12[%c6_42, %c32_43], %180 {strides = array<i32>} : memref<16x128xf32, #tpu.memory_space<vmem>>, vector<2x32xf32>,
    %182 = arith.truncf %177 : vector<2x64xf32> to vector<2x64xbf16>
    %cst_44 = arith.constant dense<0.000000e+00> : vector<2x192xf32>
    %183 = tpu.matmul %182, %6, %cst_44 {dimension_numbers = #tpu.dot_dimension_numbers<[1], [0], [0], [1], [0, 0, 1, 1], [], []>} : vector<2x64xbf16>, vector<64x192xbf16>, vector<2x192xf32> -> vector<2x192xf32>
    %184 = vector.extract_strided_slice %5 {offsets = [10, 0], sizes = [2, 192], strides = [1, 1]} : vector<16x192xf32> to vector<2x192xf32>
    %185 = vector.extract_strided_slice %184 {offsets = [0, 0], sizes = [2, 64], strides = [1, 1]} : vector<2x192xf32> to vector<2x64xf32>
    %186 = vector.extract_strided_slice %183 {offsets = [0, 0], sizes = [2, 64], strides = [1, 1]} : vector<2x192xf32> to vector<2x64xf32>
    %187 = arith.addf %185, %186 : vector<2x64xf32>
    %188 = arith.negf %187 : vector<2x64xf32>
    %189 = math.exp %188 : vector<2x64xf32>
    %cst_45 = arith.constant 1.000000e+00 : f32
    %190 = vector.broadcast %cst_45 : f32 to vector<2x64xf32>
    %191 = arith.addf %190, %189 : vector<2x64xf32>
    %192 = arith.divf %190, %191 : vector<2x64xf32>
    %193 = vector.extract_strided_slice %184 {offsets = [0, 64], sizes = [2, 64], strides = [1, 1]} : vector<2x192xf32> to vector<2x64xf32>
    %194 = vector.extract_strided_slice %183 {offsets = [0, 64], sizes = [2, 64], strides = [1, 1]} : vector<2x192xf32> to vector<2x64xf32>
    %195 = arith.addf %193, %194 : vector<2x64xf32>
    %196 = arith.negf %195 : vector<2x64xf32>
    %197 = math.exp %196 : vector<2x64xf32>
    %cst_46 = arith.constant 1.000000e+00 : f32
    %198 = vector.broadcast %cst_46 : f32 to vector<2x64xf32>
    %199 = arith.addf %198, %197 : vector<2x64xf32>
    %200 = arith.divf %198, %199 : vector<2x64xf32>
    %201 = vector.extract_strided_slice %184 {offsets = [0, 128], sizes = [2, 64], strides = [1, 1]} : vector<2x192xf32> to vector<2x64xf32>
    %202 = vector.extract_strided_slice %183 {offsets = [0, 128], sizes = [2, 64], strides = [1, 1]} : vector<2x192xf32> to vector<2x64xf32>
    %203 = arith.addf %202, %9 : vector<2x64xf32>
    %204 = arith.mulf %192, %203 : vector<2x64xf32>
    %205 = arith.addf %201, %204 : vector<2x64xf32>
    %206 = math.tanh %205 : vector<2x64xf32>
    %cst_47 = arith.constant 1.000000e+00 : f32
    %207 = vector.broadcast %cst_47 : f32 to vector<2x64xf32>
    %208 = arith.subf %207, %200 : vector<2x64xf32>
    %209 = arith.mulf %208, %206 : vector<2x64xf32>
    %210 = arith.mulf %200, %177 : vector<2x64xf32>
    %211 = arith.addf %209, %210 : vector<2x64xf32>
    %212 = vector.extract_strided_slice %211 {offsets = [0, 0], sizes = [2, 32], strides = [1, 1]} : vector<2x64xf32> to vector<2x32xf32>
    %c10_48 = arith.constant 10 : index
    %c0_49 = arith.constant 0 : index
    %213 = vector.load %arg12[%c10_48, %c0_49] : memref<16x128xf32, #tpu.memory_space<vmem>>, vector<2x32xf32>
    tpu.vector_store %arg12[%c10_48, %c0_49], %212 {strides = array<i32>} : memref<16x128xf32, #tpu.memory_space<vmem>>, vector<2x32xf32>,
    %214 = vector.extract_strided_slice %211 {offsets = [0, 32], sizes = [2, 32], strides = [1, 1]} : vector<2x64xf32> to vector<2x32xf32>
    %c4_50 = arith.constant 4 : index
    %c32_51 = arith.constant 32 : index
    %215 = vector.load %arg12[%c4_50, %c32_51] : memref<16x128xf32, #tpu.memory_space<vmem>>, vector<2x32xf32>
    tpu.vector_store %arg12[%c4_50, %c32_51], %214 {strides = array<i32>} : memref<16x128xf32, #tpu.memory_space<vmem>>, vector<2x32xf32>,
    %216 = arith.truncf %211 : vector<2x64xf32> to vector<2x64xbf16>
    %cst_52 = arith.constant dense<0.000000e+00> : vector<2x192xf32>
    %217 = tpu.matmul %216, %6, %cst_52 {dimension_numbers = #tpu.dot_dimension_numbers<[1], [0], [0], [1], [0, 0, 1, 1], [], []>} : vector<2x64xbf16>, vector<64x192xbf16>, vector<2x192xf32> -> vector<2x192xf32>
    %218 = vector.extract_strided_slice %5 {offsets = [12, 0], sizes = [2, 192], strides = [1, 1]} : vector<16x192xf32> to vector<2x192xf32>
    %219 = vector.extract_strided_slice %218 {offsets = [0, 0], sizes = [2, 64], strides = [1, 1]} : vector<2x192xf32> to vector<2x64xf32>
    %220 = vector.extract_strided_slice %217 {offsets = [0, 0], sizes = [2, 64], strides = [1, 1]} : vector<2x192xf32> to vector<2x64xf32>
    %221 = arith.addf %219, %220 : vector<2x64xf32>
    %222 = arith.negf %221 : vector<2x64xf32>
    %223 = math.exp %222 : vector<2x64xf32>
    %cst_53 = arith.constant 1.000000e+00 : f32
    %224 = vector.broadcast %cst_53 : f32 to vector<2x64xf32>
    %225 = arith.addf %224, %223 : vector<2x64xf32>
    %226 = arith.divf %224, %225 : vector<2x64xf32>
    %227 = vector.extract_strided_slice %218 {offsets = [0, 64], sizes = [2, 64], strides = [1, 1]} : vector<2x192xf32> to vector<2x64xf32>
    %228 = vector.extract_strided_slice %217 {offsets = [0, 64], sizes = [2, 64], strides = [1, 1]} : vector<2x192xf32> to vector<2x64xf32>
    %229 = arith.addf %227, %228 : vector<2x64xf32>
    %230 = arith.negf %229 : vector<2x64xf32>
    %231 = math.exp %230 : vector<2x64xf32>
    %cst_54 = arith.constant 1.000000e+00 : f32
    %232 = vector.broadcast %cst_54 : f32 to vector<2x64xf32>
    %233 = arith.addf %232, %231 : vector<2x64xf32>
    %234 = arith.divf %232, %233 : vector<2x64xf32>
    %235 = vector.extract_strided_slice %218 {offsets = [0, 128], sizes = [2, 64], strides = [1, 1]} : vector<2x192xf32> to vector<2x64xf32>
    %236 = vector.extract_strided_slice %217 {offsets = [0, 128], sizes = [2, 64], strides = [1, 1]} : vector<2x192xf32> to vector<2x64xf32>
    %237 = arith.addf %236, %9 : vector<2x64xf32>
    %238 = arith.mulf %226, %237 : vector<2x64xf32>
    %239 = arith.addf %235, %238 : vector<2x64xf32>
    %240 = math.tanh %239 : vector<2x64xf32>
    %cst_55 = arith.constant 1.000000e+00 : f32
    %241 = vector.broadcast %cst_55 : f32 to vector<2x64xf32>
    %242 = arith.subf %241, %234 : vector<2x64xf32>
    %243 = arith.mulf %242, %240 : vector<2x64xf32>
    %244 = arith.mulf %234, %211 : vector<2x64xf32>
    %245 = arith.addf %243, %244 : vector<2x64xf32>
    %246 = vector.extract_strided_slice %245 {offsets = [0, 0], sizes = [2, 32], strides = [1, 1]} : vector<2x64xf32> to vector<2x32xf32>
    %c12_56 = arith.constant 12 : index
    %c0_57 = arith.constant 0 : index
    %247 = vector.load %arg12[%c12_56, %c0_57] : memref<16x128xf32, #tpu.memory_space<vmem>>, vector<2x32xf32>
    tpu.vector_store %arg12[%c12_56, %c0_57], %246 {strides = array<i32>} : memref<16x128xf32, #tpu.memory_space<vmem>>, vector<2x32xf32>,
    %248 = vector.extract_strided_slice %245 {offsets = [0, 32], sizes = [2, 32], strides = [1, 1]} : vector<2x64xf32> to vector<2x32xf32>
    %c2_58 = arith.constant 2 : index
    %c32_59 = arith.constant 32 : index
    %249 = vector.load %arg12[%c2_58, %c32_59] : memref<16x128xf32, #tpu.memory_space<vmem>>, vector<2x32xf32>
    tpu.vector_store %arg12[%c2_58, %c32_59], %248 {strides = array<i32>} : memref<16x128xf32, #tpu.memory_space<vmem>>, vector<2x32xf32>,
    %250 = arith.truncf %245 : vector<2x64xf32> to vector<2x64xbf16>
    %cst_60 = arith.constant dense<0.000000e+00> : vector<2x192xf32>
    %251 = tpu.matmul %250, %6, %cst_60 {dimension_numbers = #tpu.dot_dimension_numbers<[1], [0], [0], [1], [0, 0, 1, 1], [], []>} : vector<2x64xbf16>, vector<64x192xbf16>, vector<2x192xf32> -> vector<2x192xf32>
    %252 = vector.extract_strided_slice %5 {offsets = [14, 0], sizes = [2, 192], strides = [1, 1]} : vector<16x192xf32> to vector<2x192xf32>
    %253 = vector.extract_strided_slice %252 {offsets = [0, 0], sizes = [2, 64], strides = [1, 1]} : vector<2x192xf32> to vector<2x64xf32>
    %254 = vector.extract_strided_slice %251 {offsets = [0, 0], sizes = [2, 64], strides = [1, 1]} : vector<2x192xf32> to vector<2x64xf32>
    %255 = arith.addf %253, %254 : vector<2x64xf32>
    %256 = arith.negf %255 : vector<2x64xf32>
    %257 = math.exp %256 : vector<2x64xf32>
    %cst_61 = arith.constant 1.000000e+00 : f32
    %258 = vector.broadcast %cst_61 : f32 to vector<2x64xf32>
    %259 = arith.addf %258, %257 : vector<2x64xf32>
    %260 = arith.divf %258, %259 : vector<2x64xf32>
    %261 = vector.extract_strided_slice %252 {offsets = [0, 64], sizes = [2, 64], strides = [1, 1]} : vector<2x192xf32> to vector<2x64xf32>
    %262 = vector.extract_strided_slice %251 {offsets = [0, 64], sizes = [2, 64], strides = [1, 1]} : vector<2x192xf32> to vector<2x64xf32>
    %263 = arith.addf %261, %262 : vector<2x64xf32>
    %264 = arith.negf %263 : vector<2x64xf32>
    %265 = math.exp %264 : vector<2x64xf32>
    %cst_62 = arith.constant 1.000000e+00 : f32
    %266 = vector.broadcast %cst_62 : f32 to vector<2x64xf32>
    %267 = arith.addf %266, %265 : vector<2x64xf32>
    %268 = arith.divf %266, %267 : vector<2x64xf32>
    %269 = vector.extract_strided_slice %252 {offsets = [0, 128], sizes = [2, 64], strides = [1, 1]} : vector<2x192xf32> to vector<2x64xf32>
    %270 = vector.extract_strided_slice %251 {offsets = [0, 128], sizes = [2, 64], strides = [1, 1]} : vector<2x192xf32> to vector<2x64xf32>
    %271 = arith.addf %270, %9 : vector<2x64xf32>
    %272 = arith.mulf %260, %271 : vector<2x64xf32>
    %273 = arith.addf %269, %272 : vector<2x64xf32>
    %274 = math.tanh %273 : vector<2x64xf32>
    %cst_63 = arith.constant 1.000000e+00 : f32
    %275 = vector.broadcast %cst_63 : f32 to vector<2x64xf32>
    %276 = arith.subf %275, %268 : vector<2x64xf32>
    %277 = arith.mulf %276, %274 : vector<2x64xf32>
    %278 = arith.mulf %268, %245 : vector<2x64xf32>
    %279 = arith.addf %277, %278 : vector<2x64xf32>
    %280 = vector.extract_strided_slice %279 {offsets = [0, 0], sizes = [2, 32], strides = [1, 1]} : vector<2x64xf32> to vector<2x32xf32>
    %c14_64 = arith.constant 14 : index
    %c0_65 = arith.constant 0 : index
    %281 = vector.load %arg12[%c14_64, %c0_65] : memref<16x128xf32, #tpu.memory_space<vmem>>, vector<2x32xf32>
    tpu.vector_store %arg12[%c14_64, %c0_65], %280 {strides = array<i32>} : memref<16x128xf32, #tpu.memory_space<vmem>>, vector<2x32xf32>,
    %282 = vector.extract_strided_slice %279 {offsets = [0, 32], sizes = [2, 32], strides = [1, 1]} : vector<2x64xf32> to vector<2x32xf32>
    %c0_66 = arith.constant 0 : index
    %c32_67 = arith.constant 32 : index
    %283 = vector.load %arg12[%c0_66, %c32_67] : memref<16x128xf32, #tpu.memory_space<vmem>>, vector<2x32xf32>
    tpu.vector_store %arg12[%c0_66, %c32_67], %282 {strides = array<i32>} : memref<16x128xf32, #tpu.memory_space<vmem>>, vector<2x32xf32>,
    %c14_68 = arith.constant 14 : index
    %c0_69 = arith.constant 0 : index
    %284 = vector.load %arg12[%c14_68, %c0_69] : memref<16x128xf32, #tpu.memory_space<vmem>>, vector<2x64xf32>
    %c0_70 = arith.constant 0 : index
    %c64 = arith.constant 64 : index
    %285 = vector.load %arg12[%c0_70, %c64] : memref<16x128xf32, #tpu.memory_space<vmem>>, vector<2x64xf32>
    tpu.vector_store %arg12[%c0_70, %c64], %284 {strides = array<i32>} : memref<16x128xf32, #tpu.memory_space<vmem>>, vector<2x64xf32>,
    %c12_71 = arith.constant 12 : index
    %c0_72 = arith.constant 0 : index
    %286 = vector.load %arg12[%c12_71, %c0_72] : memref<16x128xf32, #tpu.memory_space<vmem>>, vector<2x64xf32>
    %c2_73 = arith.constant 2 : index
    %c64_74 = arith.constant 64 : index
    %287 = vector.load %arg12[%c2_73, %c64_74] : memref<16x128xf32, #tpu.memory_space<vmem>>, vector<2x64xf32>
    tpu.vector_store %arg12[%c2_73, %c64_74], %286 {strides = array<i32>} : memref<16x128xf32, #tpu.memory_space<vmem>>, vector<2x64xf32>,
    %c10_75 = arith.constant 10 : index
    %c0_76 = arith.constant 0 : index
    %288 = vector.load %arg12[%c10_75, %c0_76] : memref<16x128xf32, #tpu.memory_space<vmem>>, vector<2x64xf32>
    %c4_77 = arith.constant 4 : index
    %c64_78 = arith.constant 64 : index
    %289 = vector.load %arg12[%c4_77, %c64_78] : memref<16x128xf32, #tpu.memory_space<vmem>>, vector<2x64xf32>
    tpu.vector_store %arg12[%c4_77, %c64_78], %288 {strides = array<i32>} : memref<16x128xf32, #tpu.memory_space<vmem>>, vector<2x64xf32>,
    %c8_79 = arith.constant 8 : index
    %c0_80 = arith.constant 0 : index
    %290 = vector.load %arg12[%c8_79, %c0_80] : memref<16x128xf32, #tpu.memory_space<vmem>>, vector<2x64xf32>
    %c6_81 = arith.constant 6 : index
    %c64_82 = arith.constant 64 : index
    %291 = vector.load %arg12[%c6_81, %c64_82] : memref<16x128xf32, #tpu.memory_space<vmem>>, vector<2x64xf32>
    tpu.vector_store %arg12[%c6_81, %c64_82], %290 {strides = array<i32>} : memref<16x128xf32, #tpu.memory_space<vmem>>, vector<2x64xf32>,
    %c6_83 = arith.constant 6 : index
    %c0_84 = arith.constant 0 : index
    %292 = vector.load %arg12[%c6_83, %c0_84] : memref<16x128xf32, #tpu.memory_space<vmem>>, vector<2x64xf32>
    %c8_85 = arith.constant 8 : index
    %c64_86 = arith.constant 64 : index
    %293 = vector.load %arg12[%c8_85, %c64_86] : memref<16x128xf32, #tpu.memory_space<vmem>>, vector<2x64xf32>
    tpu.vector_store %arg12[%c8_85, %c64_86], %292 {strides = array<i32>} : memref<16x128xf32, #tpu.memory_space<vmem>>, vector<2x64xf32>,
    %c4_87 = arith.constant 4 : index
    %c0_88 = arith.constant 0 : index
    %294 = vector.load %arg12[%c4_87, %c0_88] : memref<16x128xf32, #tpu.memory_space<vmem>>, vector<2x64xf32>
    %c10_89 = arith.constant 10 : index
    %c64_90 = arith.constant 64 : index
    %295 = vector.load %arg12[%c10_89, %c64_90] : memref<16x128xf32, #tpu.memory_space<vmem>>, vector<2x64xf32>
    tpu.vector_store %arg12[%c10_89, %c64_90], %294 {strides = array<i32>} : memref<16x128xf32, #tpu.memory_space<vmem>>, vector<2x64xf32>,
    %c2_91 = arith.constant 2 : index
    %c0_92 = arith.constant 0 : index
    %296 = vector.load %arg12[%c2_91, %c0_92] : memref<16x128xf32, #tpu.memory_space<vmem>>, vector<2x64xf32>
    %c12_93 = arith.constant 12 : index
    %c64_94 = arith.constant 64 : index
    %297 = vector.load %arg12[%c12_93, %c64_94] : memref<16x128xf32, #tpu.memory_space<vmem>>, vector<2x64xf32>
    tpu.vector_store %arg12[%c12_93, %c64_94], %296 {strides = array<i32>} : memref<16x128xf32, #tpu.memory_space<vmem>>, vector<2x64xf32>,
    %c0_95 = arith.constant 0 : index
    %c0_96 = arith.constant 0 : index
    %298 = vector.load %arg12[%c0_95, %c0_96] : memref<16x128xf32, #tpu.memory_space<vmem>>, vector<2x64xf32>
    %c14_97 = arith.constant 14 : index
    %c64_98 = arith.constant 64 : index
    %299 = vector.load %arg12[%c14_97, %c64_98] : memref<16x128xf32, #tpu.memory_space<vmem>>, vector<2x64xf32>
    tpu.vector_store %arg12[%c14_97, %c64_98], %298 {strides = array<i32>} : memref<16x128xf32, #tpu.memory_space<vmem>>, vector<2x64xf32>,
    %c0_99 = arith.constant 0 : index
    %c0_100 = arith.constant 0 : index
    %300 = vector.load %arg12[%c0_99, %c0_100] : memref<16x128xf32, #tpu.memory_space<vmem>>, vector<16x128xf32>
    %301 = arith.truncf %300 : vector<16x128xf32> to vector<16x128xbf16>
    %c0_101 = arith.constant 0 : index
    %c0_102 = arith.constant 0 : index
    %302 = vector.load %arg7[%c0_101, %c0_102] : memref<128x192xbf16, #tpu.memory_space<vmem>>, vector<128x192xbf16>
    %cst_103 = arith.constant dense<0.000000e+00> : vector<16x192xf32>
    %303 = tpu.matmul %301, %302, %cst_103 {dimension_numbers = #tpu.dot_dimension_numbers<[1], [0], [0], [1], [0, 0, 1, 1], [], []>} : vector<16x128xbf16>, vector<128x192xbf16>, vector<16x192xf32> -> vector<16x192xf32>
    %c0_104 = arith.constant 0 : index
    %c0_105 = arith.constant 0 : index
    %304 = vector.load %arg9[%c0_104, %c0_105] : memref<1x192xf32, #tpu.memory_space<vmem>>, vector<1x192xf32>
    %305 = vector.broadcast %304 : vector<1x192xf32> to vector<16x192xf32>
    %306 = arith.addf %303, %305 : vector<16x192xf32>
    %c0_106 = arith.constant 0 : index
    %c0_107 = arith.constant 0 : index
    %307 = vector.load %arg8[%c0_106, %c0_107] : memref<64x192xbf16, #tpu.memory_space<vmem>>, vector<64x192xbf16>
    %c0_108 = arith.constant 0 : index
    %c0_109 = arith.constant 0 : index
    %308 = vector.load %arg10[%c0_108, %c0_109] : memref<1x64xf32, #tpu.memory_space<vmem>>, vector<1x64xf32>
    %309 = vector.shape_cast %308 : vector<1x64xf32> to vector<1x64xf32>
    %310 = vector.broadcast %309 : vector<1x64xf32> to vector<2x64xf32>
    %c1 = arith.constant 1 : index
    %c0_110 = arith.constant 0 : index
    %c0_111 = arith.constant 0 : index
    %311 = vector.load %arg2[%c1, %c0_110, %c0_111] : memref<2x2x64xf32, #tpu.memory_space<vmem>>, vector<1x2x64xf32>
    %312 = vector.shape_cast %311 : vector<1x2x64xf32> to vector<2x64xf32>
    %313 = arith.truncf %312 : vector<2x64xf32> to vector<2x64xbf16>
    %cst_112 = arith.constant dense<0.000000e+00> : vector<2x192xf32>
    %314 = tpu.matmul %313, %307, %cst_112 {dimension_numbers = #tpu.dot_dimension_numbers<[1], [0], [0], [1], [0, 0, 1, 1], [], []>} : vector<2x64xbf16>, vector<64x192xbf16>, vector<2x192xf32> -> vector<2x192xf32>
    %315 = vector.extract_strided_slice %306 {offsets = [0, 0], sizes = [2, 192], strides = [1, 1]} : vector<16x192xf32> to vector<2x192xf32>
    %316 = vector.extract_strided_slice %315 {offsets = [0, 0], sizes = [2, 64], strides = [1, 1]} : vector<2x192xf32> to vector<2x64xf32>
    %317 = vector.extract_strided_slice %314 {offsets = [0, 0], sizes = [2, 64], strides = [1, 1]} : vector<2x192xf32> to vector<2x64xf32>
    %318 = arith.addf %316, %317 : vector<2x64xf32>
    %319 = arith.negf %318 : vector<2x64xf32>
    %320 = math.exp %319 : vector<2x64xf32>
    %cst_113 = arith.constant 1.000000e+00 : f32
    %321 = vector.broadcast %cst_113 : f32 to vector<2x64xf32>
    %322 = arith.addf %321, %320 : vector<2x64xf32>
    %323 = arith.divf %321, %322 : vector<2x64xf32>
    %324 = vector.extract_strided_slice %315 {offsets = [0, 64], sizes = [2, 64], strides = [1, 1]} : vector<2x192xf32> to vector<2x64xf32>
    %325 = vector.extract_strided_slice %314 {offsets = [0, 64], sizes = [2, 64], strides = [1, 1]} : vector<2x192xf32> to vector<2x64xf32>
    %326 = arith.addf %324, %325 : vector<2x64xf32>
    %327 = arith.negf %326 : vector<2x64xf32>
    %328 = math.exp %327 : vector<2x64xf32>
    %cst_114 = arith.constant 1.000000e+00 : f32
    %329 = vector.broadcast %cst_114 : f32 to vector<2x64xf32>
    %330 = arith.addf %329, %328 : vector<2x64xf32>
    %331 = arith.divf %329, %330 : vector<2x64xf32>
    %332 = vector.extract_strided_slice %315 {offsets = [0, 128], sizes = [2, 64], strides = [1, 1]} : vector<2x192xf32> to vector<2x64xf32>
    %333 = vector.extract_strided_slice %314 {offsets = [0, 128], sizes = [2, 64], strides = [1, 1]} : vector<2x192xf32> to vector<2x64xf32>
    %334 = arith.addf %333, %310 : vector<2x64xf32>
    %335 = arith.mulf %323, %334 : vector<2x64xf32>
    %336 = arith.addf %332, %335 : vector<2x64xf32>
    %337 = math.tanh %336 : vector<2x64xf32>
    %cst_115 = arith.constant 1.000000e+00 : f32
    %338 = vector.broadcast %cst_115 : f32 to vector<2x64xf32>
    %339 = arith.subf %338, %331 : vector<2x64xf32>
    %340 = arith.mulf %339, %337 : vector<2x64xf32>
    %341 = arith.mulf %331, %312 : vector<2x64xf32>
    %342 = arith.addf %340, %341 : vector<2x64xf32>
    %343 = vector.extract_strided_slice %342 {offsets = [0, 0], sizes = [2, 32], strides = [1, 1]} : vector<2x64xf32> to vector<2x32xf32>
    %c0_116 = arith.constant 0 : index
    %c0_117 = arith.constant 0 : index
    %344 = vector.load %arg11[%c0_116, %c0_117] : memref<16x64xf32, #tpu.memory_space<vmem>>, vector<2x32xf32>
    tpu.vector_store %arg11[%c0_116, %c0_117], %343 {strides = array<i32>} : memref<16x64xf32, #tpu.memory_space<vmem>>, vector<2x32xf32>,
    %345 = vector.extract_strided_slice %342 {offsets = [0, 32], sizes = [2, 32], strides = [1, 1]} : vector<2x64xf32> to vector<2x32xf32>
    %c14_118 = arith.constant 14 : index
    %c32_119 = arith.constant 32 : index
    %346 = vector.load %arg11[%c14_118, %c32_119] : memref<16x64xf32, #tpu.memory_space<vmem>>, vector<2x32xf32>
    tpu.vector_store %arg11[%c14_118, %c32_119], %345 {strides = array<i32>} : memref<16x64xf32, #tpu.memory_space<vmem>>, vector<2x32xf32>,
    %347 = arith.truncf %342 : vector<2x64xf32> to vector<2x64xbf16>
    %cst_120 = arith.constant dense<0.000000e+00> : vector<2x192xf32>
    %348 = tpu.matmul %347, %307, %cst_120 {dimension_numbers = #tpu.dot_dimension_numbers<[1], [0], [0], [1], [0, 0, 1, 1], [], []>} : vector<2x64xbf16>, vector<64x192xbf16>, vector<2x192xf32> -> vector<2x192xf32>
    %349 = vector.extract_strided_slice %306 {offsets = [2, 0], sizes = [2, 192], strides = [1, 1]} : vector<16x192xf32> to vector<2x192xf32>
    %350 = vector.extract_strided_slice %349 {offsets = [0, 0], sizes = [2, 64], strides = [1, 1]} : vector<2x192xf32> to vector<2x64xf32>
    %351 = vector.extract_strided_slice %348 {offsets = [0, 0], sizes = [2, 64], strides = [1, 1]} : vector<2x192xf32> to vector<2x64xf32>
    %352 = arith.addf %350, %351 : vector<2x64xf32>
    %353 = arith.negf %352 : vector<2x64xf32>
    %354 = math.exp %353 : vector<2x64xf32>
    %cst_121 = arith.constant 1.000000e+00 : f32
    %355 = vector.broadcast %cst_121 : f32 to vector<2x64xf32>
    %356 = arith.addf %355, %354 : vector<2x64xf32>
    %357 = arith.divf %355, %356 : vector<2x64xf32>
    %358 = vector.extract_strided_slice %349 {offsets = [0, 64], sizes = [2, 64], strides = [1, 1]} : vector<2x192xf32> to vector<2x64xf32>
    %359 = vector.extract_strided_slice %348 {offsets = [0, 64], sizes = [2, 64], strides = [1, 1]} : vector<2x192xf32> to vector<2x64xf32>
    %360 = arith.addf %358, %359 : vector<2x64xf32>
    %361 = arith.negf %360 : vector<2x64xf32>
    %362 = math.exp %361 : vector<2x64xf32>
    %cst_122 = arith.constant 1.000000e+00 : f32
    %363 = vector.broadcast %cst_122 : f32 to vector<2x64xf32>
    %364 = arith.addf %363, %362 : vector<2x64xf32>
    %365 = arith.divf %363, %364 : vector<2x64xf32>
    %366 = vector.extract_strided_slice %349 {offsets = [0, 128], sizes = [2, 64], strides = [1, 1]} : vector<2x192xf32> to vector<2x64xf32>
    %367 = vector.extract_strided_slice %348 {offsets = [0, 128], sizes = [2, 64], strides = [1, 1]} : vector<2x192xf32> to vector<2x64xf32>
    %368 = arith.addf %367, %310 : vector<2x64xf32>
    %369 = arith.mulf %357, %368 : vector<2x64xf32>
    %370 = arith.addf %366, %369 : vector<2x64xf32>
    %371 = math.tanh %370 : vector<2x64xf32>
    %cst_123 = arith.constant 1.000000e+00 : f32
    %372 = vector.broadcast %cst_123 : f32 to vector<2x64xf32>
    %373 = arith.subf %372, %365 : vector<2x64xf32>
    %374 = arith.mulf %373, %371 : vector<2x64xf32>
    %375 = arith.mulf %365, %342 : vector<2x64xf32>
    %376 = arith.addf %374, %375 : vector<2x64xf32>
    %377 = vector.extract_strided_slice %376 {offsets = [0, 0], sizes = [2, 32], strides = [1, 1]} : vector<2x64xf32> to vector<2x32xf32>
    %c2_124 = arith.constant 2 : index
    %c0_125 = arith.constant 0 : index
    %378 = vector.load %arg11[%c2_124, %c0_125] : memref<16x64xf32, #tpu.memory_space<vmem>>, vector<2x32xf32>
    tpu.vector_store %arg11[%c2_124, %c0_125], %377 {strides = array<i32>} : memref<16x64xf32, #tpu.memory_space<vmem>>, vector<2x32xf32>,
    %379 = vector.extract_strided_slice %376 {offsets = [0, 32], sizes = [2, 32], strides = [1, 1]} : vector<2x64xf32> to vector<2x32xf32>
    %c12_126 = arith.constant 12 : index
    %c32_127 = arith.constant 32 : index
    %380 = vector.load %arg11[%c12_126, %c32_127] : memref<16x64xf32, #tpu.memory_space<vmem>>, vector<2x32xf32>
    tpu.vector_store %arg11[%c12_126, %c32_127], %379 {strides = array<i32>} : memref<16x64xf32, #tpu.memory_space<vmem>>, vector<2x32xf32>,
    %381 = arith.truncf %376 : vector<2x64xf32> to vector<2x64xbf16>
    %cst_128 = arith.constant dense<0.000000e+00> : vector<2x192xf32>
    %382 = tpu.matmul %381, %307, %cst_128 {dimension_numbers = #tpu.dot_dimension_numbers<[1], [0], [0], [1], [0, 0, 1, 1], [], []>} : vector<2x64xbf16>, vector<64x192xbf16>, vector<2x192xf32> -> vector<2x192xf32>
    %383 = vector.extract_strided_slice %306 {offsets = [4, 0], sizes = [2, 192], strides = [1, 1]} : vector<16x192xf32> to vector<2x192xf32>
    %384 = vector.extract_strided_slice %383 {offsets = [0, 0], sizes = [2, 64], strides = [1, 1]} : vector<2x192xf32> to vector<2x64xf32>
    %385 = vector.extract_strided_slice %382 {offsets = [0, 0], sizes = [2, 64], strides = [1, 1]} : vector<2x192xf32> to vector<2x64xf32>
    %386 = arith.addf %384, %385 : vector<2x64xf32>
    %387 = arith.negf %386 : vector<2x64xf32>
    %388 = math.exp %387 : vector<2x64xf32>
    %cst_129 = arith.constant 1.000000e+00 : f32
    %389 = vector.broadcast %cst_129 : f32 to vector<2x64xf32>
    %390 = arith.addf %389, %388 : vector<2x64xf32>
    %391 = arith.divf %389, %390 : vector<2x64xf32>
    %392 = vector.extract_strided_slice %383 {offsets = [0, 64], sizes = [2, 64], strides = [1, 1]} : vector<2x192xf32> to vector<2x64xf32>
    %393 = vector.extract_strided_slice %382 {offsets = [0, 64], sizes = [2, 64], strides = [1, 1]} : vector<2x192xf32> to vector<2x64xf32>
    %394 = arith.addf %392, %393 : vector<2x64xf32>
    %395 = arith.negf %394 : vector<2x64xf32>
    %396 = math.exp %395 : vector<2x64xf32>
    %cst_130 = arith.constant 1.000000e+00 : f32
    %397 = vector.broadcast %cst_130 : f32 to vector<2x64xf32>
    %398 = arith.addf %397, %396 : vector<2x64xf32>
    %399 = arith.divf %397, %398 : vector<2x64xf32>
    %400 = vector.extract_strided_slice %383 {offsets = [0, 128], sizes = [2, 64], strides = [1, 1]} : vector<2x192xf32> to vector<2x64xf32>
    %401 = vector.extract_strided_slice %382 {offsets = [0, 128], sizes = [2, 64], strides = [1, 1]} : vector<2x192xf32> to vector<2x64xf32>
    %402 = arith.addf %401, %310 : vector<2x64xf32>
    %403 = arith.mulf %391, %402 : vector<2x64xf32>
    %404 = arith.addf %400, %403 : vector<2x64xf32>
    %405 = math.tanh %404 : vector<2x64xf32>
    %cst_131 = arith.constant 1.000000e+00 : f32
    %406 = vector.broadcast %cst_131 : f32 to vector<2x64xf32>
    %407 = arith.subf %406, %399 : vector<2x64xf32>
    %408 = arith.mulf %407, %405 : vector<2x64xf32>
    %409 = arith.mulf %399, %376 : vector<2x64xf32>
    %410 = arith.addf %408, %409 : vector<2x64xf32>
    %411 = vector.extract_strided_slice %410 {offsets = [0, 0], sizes = [2, 32], strides = [1, 1]} : vector<2x64xf32> to vector<2x32xf32>
    %c4_132 = arith.constant 4 : index
    %c0_133 = arith.constant 0 : index
    %412 = vector.load %arg11[%c4_132, %c0_133] : memref<16x64xf32, #tpu.memory_space<vmem>>, vector<2x32xf32>
    tpu.vector_store %arg11[%c4_132, %c0_133], %411 {strides = array<i32>} : memref<16x64xf32, #tpu.memory_space<vmem>>, vector<2x32xf32>,
    %413 = vector.extract_strided_slice %410 {offsets = [0, 32], sizes = [2, 32], strides = [1, 1]} : vector<2x64xf32> to vector<2x32xf32>
    %c10_134 = arith.constant 10 : index
    %c32_135 = arith.constant 32 : index
    %414 = vector.load %arg11[%c10_134, %c32_135] : memref<16x64xf32, #tpu.memory_space<vmem>>, vector<2x32xf32>
    tpu.vector_store %arg11[%c10_134, %c32_135], %413 {strides = array<i32>} : memref<16x64xf32, #tpu.memory_space<vmem>>, vector<2x32xf32>,
    %415 = arith.truncf %410 : vector<2x64xf32> to vector<2x64xbf16>
    %cst_136 = arith.constant dense<0.000000e+00> : vector<2x192xf32>
    %416 = tpu.matmul %415, %307, %cst_136 {dimension_numbers = #tpu.dot_dimension_numbers<[1], [0], [0], [1], [0, 0, 1, 1], [], []>} : vector<2x64xbf16>, vector<64x192xbf16>, vector<2x192xf32> -> vector<2x192xf32>
    %417 = vector.extract_strided_slice %306 {offsets = [6, 0], sizes = [2, 192], strides = [1, 1]} : vector<16x192xf32> to vector<2x192xf32>
    %418 = vector.extract_strided_slice %417 {offsets = [0, 0], sizes = [2, 64], strides = [1, 1]} : vector<2x192xf32> to vector<2x64xf32>
    %419 = vector.extract_strided_slice %416 {offsets = [0, 0], sizes = [2, 64], strides = [1, 1]} : vector<2x192xf32> to vector<2x64xf32>
    %420 = arith.addf %418, %419 : vector<2x64xf32>
    %421 = arith.negf %420 : vector<2x64xf32>
    %422 = math.exp %421 : vector<2x64xf32>
    %cst_137 = arith.constant 1.000000e+00 : f32
    %423 = vector.broadcast %cst_137 : f32 to vector<2x64xf32>
    %424 = arith.addf %423, %422 : vector<2x64xf32>
    %425 = arith.divf %423, %424 : vector<2x64xf32>
    %426 = vector.extract_strided_slice %417 {offsets = [0, 64], sizes = [2, 64], strides = [1, 1]} : vector<2x192xf32> to vector<2x64xf32>
    %427 = vector.extract_strided_slice %416 {offsets = [0, 64], sizes = [2, 64], strides = [1, 1]} : vector<2x192xf32> to vector<2x64xf32>
    %428 = arith.addf %426, %427 : vector<2x64xf32>
    %429 = arith.negf %428 : vector<2x64xf32>
    %430 = math.exp %429 : vector<2x64xf32>
    %cst_138 = arith.constant 1.000000e+00 : f32
    %431 = vector.broadcast %cst_138 : f32 to vector<2x64xf32>
    %432 = arith.addf %431, %430 : vector<2x64xf32>
    %433 = arith.divf %431, %432 : vector<2x64xf32>
    %434 = vector.extract_strided_slice %417 {offsets = [0, 128], sizes = [2, 64], strides = [1, 1]} : vector<2x192xf32> to vector<2x64xf32>
    %435 = vector.extract_strided_slice %416 {offsets = [0, 128], sizes = [2, 64], strides = [1, 1]} : vector<2x192xf32> to vector<2x64xf32>
    %436 = arith.addf %435, %310 : vector<2x64xf32>
    %437 = arith.mulf %425, %436 : vector<2x64xf32>
    %438 = arith.addf %434, %437 : vector<2x64xf32>
    %439 = math.tanh %438 : vector<2x64xf32>
    %cst_139 = arith.constant 1.000000e+00 : f32
    %440 = vector.broadcast %cst_139 : f32 to vector<2x64xf32>
    %441 = arith.subf %440, %433 : vector<2x64xf32>
    %442 = arith.mulf %441, %439 : vector<2x64xf32>
    %443 = arith.mulf %433, %410 : vector<2x64xf32>
    %444 = arith.addf %442, %443 : vector<2x64xf32>
    %445 = vector.extract_strided_slice %444 {offsets = [0, 0], sizes = [2, 32], strides = [1, 1]} : vector<2x64xf32> to vector<2x32xf32>
    %c6_140 = arith.constant 6 : index
    %c0_141 = arith.constant 0 : index
    %446 = vector.load %arg11[%c6_140, %c0_141] : memref<16x64xf32, #tpu.memory_space<vmem>>, vector<2x32xf32>
    tpu.vector_store %arg11[%c6_140, %c0_141], %445 {strides = array<i32>} : memref<16x64xf32, #tpu.memory_space<vmem>>, vector<2x32xf32>,
    %447 = vector.extract_strided_slice %444 {offsets = [0, 32], sizes = [2, 32], strides = [1, 1]} : vector<2x64xf32> to vector<2x32xf32>
    %c8_142 = arith.constant 8 : index
    %c32_143 = arith.constant 32 : index
    %448 = vector.load %arg11[%c8_142, %c32_143] : memref<16x64xf32, #tpu.memory_space<vmem>>, vector<2x32xf32>
    tpu.vector_store %arg11[%c8_142, %c32_143], %447 {strides = array<i32>} : memref<16x64xf32, #tpu.memory_space<vmem>>, vector<2x32xf32>,
    %449 = arith.truncf %444 : vector<2x64xf32> to vector<2x64xbf16>
    %cst_144 = arith.constant dense<0.000000e+00> : vector<2x192xf32>
    %450 = tpu.matmul %449, %307, %cst_144 {dimension_numbers = #tpu.dot_dimension_numbers<[1], [0], [0], [1], [0, 0, 1, 1], [], []>} : vector<2x64xbf16>, vector<64x192xbf16>, vector<2x192xf32> -> vector<2x192xf32>
    %451 = vector.extract_strided_slice %306 {offsets = [8, 0], sizes = [2, 192], strides = [1, 1]} : vector<16x192xf32> to vector<2x192xf32>
    %452 = vector.extract_strided_slice %451 {offsets = [0, 0], sizes = [2, 64], strides = [1, 1]} : vector<2x192xf32> to vector<2x64xf32>
    %453 = vector.extract_strided_slice %450 {offsets = [0, 0], sizes = [2, 64], strides = [1, 1]} : vector<2x192xf32> to vector<2x64xf32>
    %454 = arith.addf %452, %453 : vector<2x64xf32>
    %455 = arith.negf %454 : vector<2x64xf32>
    %456 = math.exp %455 : vector<2x64xf32>
    %cst_145 = arith.constant 1.000000e+00 : f32
    %457 = vector.broadcast %cst_145 : f32 to vector<2x64xf32>
    %458 = arith.addf %457, %456 : vector<2x64xf32>
    %459 = arith.divf %457, %458 : vector<2x64xf32>
    %460 = vector.extract_strided_slice %451 {offsets = [0, 64], sizes = [2, 64], strides = [1, 1]} : vector<2x192xf32> to vector<2x64xf32>
    %461 = vector.extract_strided_slice %450 {offsets = [0, 64], sizes = [2, 64], strides = [1, 1]} : vector<2x192xf32> to vector<2x64xf32>
    %462 = arith.addf %460, %461 : vector<2x64xf32>
    %463 = arith.negf %462 : vector<2x64xf32>
    %464 = math.exp %463 : vector<2x64xf32>
    %cst_146 = arith.constant 1.000000e+00 : f32
    %465 = vector.broadcast %cst_146 : f32 to vector<2x64xf32>
    %466 = arith.addf %465, %464 : vector<2x64xf32>
    %467 = arith.divf %465, %466 : vector<2x64xf32>
    %468 = vector.extract_strided_slice %451 {offsets = [0, 128], sizes = [2, 64], strides = [1, 1]} : vector<2x192xf32> to vector<2x64xf32>
    %469 = vector.extract_strided_slice %450 {offsets = [0, 128], sizes = [2, 64], strides = [1, 1]} : vector<2x192xf32> to vector<2x64xf32>
    %470 = arith.addf %469, %310 : vector<2x64xf32>
    %471 = arith.mulf %459, %470 : vector<2x64xf32>
    %472 = arith.addf %468, %471 : vector<2x64xf32>
    %473 = math.tanh %472 : vector<2x64xf32>
    %cst_147 = arith.constant 1.000000e+00 : f32
    %474 = vector.broadcast %cst_147 : f32 to vector<2x64xf32>
    %475 = arith.subf %474, %467 : vector<2x64xf32>
    %476 = arith.mulf %475, %473 : vector<2x64xf32>
    %477 = arith.mulf %467, %444 : vector<2x64xf32>
    %478 = arith.addf %476, %477 : vector<2x64xf32>
    %479 = vector.extract_strided_slice %478 {offsets = [0, 0], sizes = [2, 32], strides = [1, 1]} : vector<2x64xf32> to vector<2x32xf32>
    %c8_148 = arith.constant 8 : index
    %c0_149 = arith.constant 0 : index
    %480 = vector.load %arg11[%c8_148, %c0_149] : memref<16x64xf32, #tpu.memory_space<vmem>>, vector<2x32xf32>
    tpu.vector_store %arg11[%c8_148, %c0_149], %479 {strides = array<i32>} : memref<16x64xf32, #tpu.memory_space<vmem>>, vector<2x32xf32>,
    %481 = vector.extract_strided_slice %478 {offsets = [0, 32], sizes = [2, 32], strides = [1, 1]} : vector<2x64xf32> to vector<2x32xf32>
    %c6_150 = arith.constant 6 : index
    %c32_151 = arith.constant 32 : index
    %482 = vector.load %arg11[%c6_150, %c32_151] : memref<16x64xf32, #tpu.memory_space<vmem>>, vector<2x32xf32>
    tpu.vector_store %arg11[%c6_150, %c32_151], %481 {strides = array<i32>} : memref<16x64xf32, #tpu.memory_space<vmem>>, vector<2x32xf32>,
    %483 = arith.truncf %478 : vector<2x64xf32> to vector<2x64xbf16>
    %cst_152 = arith.constant dense<0.000000e+00> : vector<2x192xf32>
    %484 = tpu.matmul %483, %307, %cst_152 {dimension_numbers = #tpu.dot_dimension_numbers<[1], [0], [0], [1], [0, 0, 1, 1], [], []>} : vector<2x64xbf16>, vector<64x192xbf16>, vector<2x192xf32> -> vector<2x192xf32>
    %485 = vector.extract_strided_slice %306 {offsets = [10, 0], sizes = [2, 192], strides = [1, 1]} : vector<16x192xf32> to vector<2x192xf32>
    %486 = vector.extract_strided_slice %485 {offsets = [0, 0], sizes = [2, 64], strides = [1, 1]} : vector<2x192xf32> to vector<2x64xf32>
    %487 = vector.extract_strided_slice %484 {offsets = [0, 0], sizes = [2, 64], strides = [1, 1]} : vector<2x192xf32> to vector<2x64xf32>
    %488 = arith.addf %486, %487 : vector<2x64xf32>
    %489 = arith.negf %488 : vector<2x64xf32>
    %490 = math.exp %489 : vector<2x64xf32>
    %cst_153 = arith.constant 1.000000e+00 : f32
    %491 = vector.broadcast %cst_153 : f32 to vector<2x64xf32>
    %492 = arith.addf %491, %490 : vector<2x64xf32>
    %493 = arith.divf %491, %492 : vector<2x64xf32>
    %494 = vector.extract_strided_slice %485 {offsets = [0, 64], sizes = [2, 64], strides = [1, 1]} : vector<2x192xf32> to vector<2x64xf32>
    %495 = vector.extract_strided_slice %484 {offsets = [0, 64], sizes = [2, 64], strides = [1, 1]} : vector<2x192xf32> to vector<2x64xf32>
    %496 = arith.addf %494, %495 : vector<2x64xf32>
    %497 = arith.negf %496 : vector<2x64xf32>
    %498 = math.exp %497 : vector<2x64xf32>
    %cst_154 = arith.constant 1.000000e+00 : f32
    %499 = vector.broadcast %cst_154 : f32 to vector<2x64xf32>
    %500 = arith.addf %499, %498 : vector<2x64xf32>
    %501 = arith.divf %499, %500 : vector<2x64xf32>
    %502 = vector.extract_strided_slice %485 {offsets = [0, 128], sizes = [2, 64], strides = [1, 1]} : vector<2x192xf32> to vector<2x64xf32>
    %503 = vector.extract_strided_slice %484 {offsets = [0, 128], sizes = [2, 64], strides = [1, 1]} : vector<2x192xf32> to vector<2x64xf32>
    %504 = arith.addf %503, %310 : vector<2x64xf32>
    %505 = arith.mulf %493, %504 : vector<2x64xf32>
    %506 = arith.addf %502, %505 : vector<2x64xf32>
    %507 = math.tanh %506 : vector<2x64xf32>
    %cst_155 = arith.constant 1.000000e+00 : f32
    %508 = vector.broadcast %cst_155 : f32 to vector<2x64xf32>
    %509 = arith.subf %508, %501 : vector<2x64xf32>
    %510 = arith.mulf %509, %507 : vector<2x64xf32>
    %511 = arith.mulf %501, %478 : vector<2x64xf32>
    %512 = arith.addf %510, %511 : vector<2x64xf32>
    %513 = vector.extract_strided_slice %512 {offsets = [0, 0], sizes = [2, 32], strides = [1, 1]} : vector<2x64xf32> to vector<2x32xf32>
    %c10_156 = arith.constant 10 : index
    %c0_157 = arith.constant 0 : index
    %514 = vector.load %arg11[%c10_156, %c0_157] : memref<16x64xf32, #tpu.memory_space<vmem>>, vector<2x32xf32>
    tpu.vector_store %arg11[%c10_156, %c0_157], %513 {strides = array<i32>} : memref<16x64xf32, #tpu.memory_space<vmem>>, vector<2x32xf32>,
    %515 = vector.extract_strided_slice %512 {offsets = [0, 32], sizes = [2, 32], strides = [1, 1]} : vector<2x64xf32> to vector<2x32xf32>
    %c4_158 = arith.constant 4 : index
    %c32_159 = arith.constant 32 : index
    %516 = vector.load %arg11[%c4_158, %c32_159] : memref<16x64xf32, #tpu.memory_space<vmem>>, vector<2x32xf32>
    tpu.vector_store %arg11[%c4_158, %c32_159], %515 {strides = array<i32>} : memref<16x64xf32, #tpu.memory_space<vmem>>, vector<2x32xf32>,
    %517 = arith.truncf %512 : vector<2x64xf32> to vector<2x64xbf16>
    %cst_160 = arith.constant dense<0.000000e+00> : vector<2x192xf32>
    %518 = tpu.matmul %517, %307, %cst_160 {dimension_numbers = #tpu.dot_dimension_numbers<[1], [0], [0], [1], [0, 0, 1, 1], [], []>} : vector<2x64xbf16>, vector<64x192xbf16>, vector<2x192xf32> -> vector<2x192xf32>
    %519 = vector.extract_strided_slice %306 {offsets = [12, 0], sizes = [2, 192], strides = [1, 1]} : vector<16x192xf32> to vector<2x192xf32>
    %520 = vector.extract_strided_slice %519 {offsets = [0, 0], sizes = [2, 64], strides = [1, 1]} : vector<2x192xf32> to vector<2x64xf32>
    %521 = vector.extract_strided_slice %518 {offsets = [0, 0], sizes = [2, 64], strides = [1, 1]} : vector<2x192xf32> to vector<2x64xf32>
    %522 = arith.addf %520, %521 : vector<2x64xf32>
    %523 = arith.negf %522 : vector<2x64xf32>
    %524 = math.exp %523 : vector<2x64xf32>
    %cst_161 = arith.constant 1.000000e+00 : f32
    %525 = vector.broadcast %cst_161 : f32 to vector<2x64xf32>
    %526 = arith.addf %525, %524 : vector<2x64xf32>
    %527 = arith.divf %525, %526 : vector<2x64xf32>
    %528 = vector.extract_strided_slice %519 {offsets = [0, 64], sizes = [2, 64], strides = [1, 1]} : vector<2x192xf32> to vector<2x64xf32>
    %529 = vector.extract_strided_slice %518 {offsets = [0, 64], sizes = [2, 64], strides = [1, 1]} : vector<2x192xf32> to vector<2x64xf32>
    %530 = arith.addf %528, %529 : vector<2x64xf32>
    %531 = arith.negf %530 : vector<2x64xf32>
    %532 = math.exp %531 : vector<2x64xf32>
    %cst_162 = arith.constant 1.000000e+00 : f32
    %533 = vector.broadcast %cst_162 : f32 to vector<2x64xf32>
    %534 = arith.addf %533, %532 : vector<2x64xf32>
    %535 = arith.divf %533, %534 : vector<2x64xf32>
    %536 = vector.extract_strided_slice %519 {offsets = [0, 128], sizes = [2, 64], strides = [1, 1]} : vector<2x192xf32> to vector<2x64xf32>
    %537 = vector.extract_strided_slice %518 {offsets = [0, 128], sizes = [2, 64], strides = [1, 1]} : vector<2x192xf32> to vector<2x64xf32>
    %538 = arith.addf %537, %310 : vector<2x64xf32>
    %539 = arith.mulf %527, %538 : vector<2x64xf32>
    %540 = arith.addf %536, %539 : vector<2x64xf32>
    %541 = math.tanh %540 : vector<2x64xf32>
    %cst_163 = arith.constant 1.000000e+00 : f32
    %542 = vector.broadcast %cst_163 : f32 to vector<2x64xf32>
    %543 = arith.subf %542, %535 : vector<2x64xf32>
    %544 = arith.mulf %543, %541 : vector<2x64xf32>
    %545 = arith.mulf %535, %512 : vector<2x64xf32>
    %546 = arith.addf %544, %545 : vector<2x64xf32>
    %547 = vector.extract_strided_slice %546 {offsets = [0, 0], sizes = [2, 32], strides = [1, 1]} : vector<2x64xf32> to vector<2x32xf32>
    %c12_164 = arith.constant 12 : index
    %c0_165 = arith.constant 0 : index
    %548 = vector.load %arg11[%c12_164, %c0_165] : memref<16x64xf32, #tpu.memory_space<vmem>>, vector<2x32xf32>
    tpu.vector_store %arg11[%c12_164, %c0_165], %547 {strides = array<i32>} : memref<16x64xf32, #tpu.memory_space<vmem>>, vector<2x32xf32>,
    %549 = vector.extract_strided_slice %546 {offsets = [0, 32], sizes = [2, 32], strides = [1, 1]} : vector<2x64xf32> to vector<2x32xf32>
    %c2_166 = arith.constant 2 : index
    %c32_167 = arith.constant 32 : index
    %550 = vector.load %arg11[%c2_166, %c32_167] : memref<16x64xf32, #tpu.memory_space<vmem>>, vector<2x32xf32>
    tpu.vector_store %arg11[%c2_166, %c32_167], %549 {strides = array<i32>} : memref<16x64xf32, #tpu.memory_space<vmem>>, vector<2x32xf32>,
    %551 = arith.truncf %546 : vector<2x64xf32> to vector<2x64xbf16>
    %cst_168 = arith.constant dense<0.000000e+00> : vector<2x192xf32>
    %552 = tpu.matmul %551, %307, %cst_168 {dimension_numbers = #tpu.dot_dimension_numbers<[1], [0], [0], [1], [0, 0, 1, 1], [], []>} : vector<2x64xbf16>, vector<64x192xbf16>, vector<2x192xf32> -> vector<2x192xf32>
    %553 = vector.extract_strided_slice %306 {offsets = [14, 0], sizes = [2, 192], strides = [1, 1]} : vector<16x192xf32> to vector<2x192xf32>
    %554 = vector.extract_strided_slice %553 {offsets = [0, 0], sizes = [2, 64], strides = [1, 1]} : vector<2x192xf32> to vector<2x64xf32>
    %555 = vector.extract_strided_slice %552 {offsets = [0, 0], sizes = [2, 64], strides = [1, 1]} : vector<2x192xf32> to vector<2x64xf32>
    %556 = arith.addf %554, %555 : vector<2x64xf32>
    %557 = arith.negf %556 : vector<2x64xf32>
    %558 = math.exp %557 : vector<2x64xf32>
    %cst_169 = arith.constant 1.000000e+00 : f32
    %559 = vector.broadcast %cst_169 : f32 to vector<2x64xf32>
    %560 = arith.addf %559, %558 : vector<2x64xf32>
    %561 = arith.divf %559, %560 : vector<2x64xf32>
    %562 = vector.extract_strided_slice %553 {offsets = [0, 64], sizes = [2, 64], strides = [1, 1]} : vector<2x192xf32> to vector<2x64xf32>
    %563 = vector.extract_strided_slice %552 {offsets = [0, 64], sizes = [2, 64], strides = [1, 1]} : vector<2x192xf32> to vector<2x64xf32>
    %564 = arith.addf %562, %563 : vector<2x64xf32>
    %565 = arith.negf %564 : vector<2x64xf32>
    %566 = math.exp %565 : vector<2x64xf32>
    %cst_170 = arith.constant 1.000000e+00 : f32
    %567 = vector.broadcast %cst_170 : f32 to vector<2x64xf32>
    %568 = arith.addf %567, %566 : vector<2x64xf32>
    %569 = arith.divf %567, %568 : vector<2x64xf32>
    %570 = vector.extract_strided_slice %553 {offsets = [0, 128], sizes = [2, 64], strides = [1, 1]} : vector<2x192xf32> to vector<2x64xf32>
    %571 = vector.extract_strided_slice %552 {offsets = [0, 128], sizes = [2, 64], strides = [1, 1]} : vector<2x192xf32> to vector<2x64xf32>
    %572 = arith.addf %571, %310 : vector<2x64xf32>
    %573 = arith.mulf %561, %572 : vector<2x64xf32>
    %574 = arith.addf %570, %573 : vector<2x64xf32>
    %575 = math.tanh %574 : vector<2x64xf32>
    %cst_171 = arith.constant 1.000000e+00 : f32
    %576 = vector.broadcast %cst_171 : f32 to vector<2x64xf32>
    %577 = arith.subf %576, %569 : vector<2x64xf32>
    %578 = arith.mulf %577, %575 : vector<2x64xf32>
    %579 = arith.mulf %569, %546 : vector<2x64xf32>
    %580 = arith.addf %578, %579 : vector<2x64xf32>
    %581 = vector.extract_strided_slice %580 {offsets = [0, 0], sizes = [2, 32], strides = [1, 1]} : vector<2x64xf32> to vector<2x32xf32>
    %c14_172 = arith.constant 14 : index
    %c0_173 = arith.constant 0 : index
    %582 = vector.load %arg11[%c14_172, %c0_173] : memref<16x64xf32, #tpu.memory_space<vmem>>, vector<2x32xf32>
    tpu.vector_store %arg11[%c14_172, %c0_173], %581 {strides = array<i32>} : memref<16x64xf32, #tpu.memory_space<vmem>>, vector<2x32xf32>,
    %583 = vector.extract_strided_slice %580 {offsets = [0, 32], sizes = [2, 32], strides = [1, 1]} : vector<2x64xf32> to vector<2x32xf32>
    %c0_174 = arith.constant 0 : index
    %c32_175 = arith.constant 32 : index
    %584 = vector.load %arg11[%c0_174, %c32_175] : memref<16x64xf32, #tpu.memory_space<vmem>>, vector<2x32xf32>
    tpu.vector_store %arg11[%c0_174, %c32_175], %583 {strides = array<i32>} : memref<16x64xf32, #tpu.memory_space<vmem>>, vector<2x32xf32>,
    return
  }
  func.func @transform_0(%arg0: i32) -> (i32, i32) {
    %c0_i32 = arith.constant 0 : i32
    %c0_i32_0 = arith.constant 0 : i32
    %c0_i32_1 = arith.constant 0 : i32
    return %c0_i32, %c0_i32_0 : i32, i32
  }
  func.func @transform_1(%arg0: i32) -> (i32, i32, i32) {
    %c0_i32 = arith.constant 0 : i32
    %c0_i32_0 = arith.constant 0 : i32
    %c0_i32_1 = arith.constant 0 : i32
    %c0_i32_2 = arith.constant 0 : i32
    return %c0_i32, %c0_i32_0, %c0_i32_1 : i32, i32, i32
  }
  func.func @transform_2(%arg0: i32) -> (i32, i32) {
    %c0_i32 = arith.constant 0 : i32
    %c0_i32_0 = arith.constant 0 : i32
    %c0_i32_1 = arith.constant 0 : i32
    return %c0_i32, %c0_i32_0 : i32, i32
  }
  func.func @transform_3(%arg0: i32) -> (i32, i32) {
    %c0_i32 = arith.constant 0 : i32
    %c0_i32_0 = arith.constant 0 : i32
    %c0_i32_1 = arith.constant 0 : i32
    return %c0_i32, %c0_i32_0 : i32, i32
  }
  func.func @transform_4(%arg0: i32) -> (i32, i32) {
    %c0_i32 = arith.constant 0 : i32
    %c0_i32_0 = arith.constant 0 : i32
    %c0_i32_1 = arith.constant 0 : i32
    return %c0_i32, %c0_i32_0 : i32, i32
  }
  func.func @transform_5(%arg0: i32) -> (i32, i32) {
    %c0_i32 = arith.constant 0 : i32
    %c0_i32_0 = arith.constant 0 : i32
    %c0_i32_1 = arith.constant 0 : i32
    return %c0_i32, %c0_i32_0 : i32, i32
  }
  func.func @transform_6(%arg0: i32) -> (i32, i32) {
    %c0_i32 = arith.constant 0 : i32
    %c0_i32_0 = arith.constant 0 : i32
    %c0_i32_1 = arith.constant 0 : i32
    return %c0_i32, %c0_i32_0 : i32, i32
  }
  func.func @transform_7(%arg0: i32) -> (i32, i32) {
    %c0_i32 = arith.constant 0 : i32
    %c0_i32_0 = arith.constant 0 : i32
    %c0_i32_1 = arith.constant 0 : i32
    return %c0_i32, %c0_i32_0 : i32, i32
  }
  func.func @transform_8(%arg0: i32) -> (i32, i32) {
    %c0_i32 = arith.constant 0 : i32
    %c0_i32_0 = arith.constant 0 : i32
    %c0_i32_1 = arith.constant 0 : i32
    return %c0_i32, %c0_i32_0 : i32, i32
  }
  func.func @transform_9(%arg0: i32) -> (i32, i32) {
    %c0_i32 = arith.constant 0 : i32
    %c0_i32_0 = arith.constant 0 : i32
    %c0_i32_1 = arith.constant 0 : i32
    return %c0_i32, %c0_i32_0 : i32, i32
  }
  func.func @transform_10(%arg0: i32) -> (i32, i32) {
    %c0_i32 = arith.constant 0 : i32
    %c0_i32_0 = arith.constant 0 : i32
    %c0_i32_1 = arith.constant 0 : i32
    return %c0_i32, %c0_i32_0 : i32, i32
  }
}

</mosaic_0001>

<bundles_post_ra>
// kernel: tpu_custom_call.1
= control target key start
LH: loop header
LB: loop body
LE: loop exit
PB: predicated region body
PF: predicated region fallthrough
CT: control target
= control target key end

     0   :  { %v2001_v2 = vmov 0   ;;  %vm80_vm0 = vcmask 261120   ;;  %vm184_vm1 = vcmask 523264   ;;  %s2644_s0 = inlined_call_operand.vmem [shape: bf16[16,32], index: 0, kind: input, shape index: {}]   ;;  %s2645_s1 = inlined_call_operand.vmem [shape: f32[2,2,64], index: 1, kind: input, shape index: {}]   ;;  %s2646_s2 = inlined_call_operand.vmem [shape: bf16[32,192], index: 2, kind: input, shape index: {}]   ;;  %s2647_s3 = inlined_call_operand.vmem [shape: bf16[64,192], index: 3, kind: input, shape index: {}]   ;;  %s2648_s4 = inlined_call_operand.vmem [shape: f32[1,192], index: 4, kind: input, shape index: {}]   ;;  %s2649_s5 = inlined_call_operand.vmem [shape: f32[1,64], index: 5, kind: input, shape index: {}]   ;;  %s2650_s6 = inlined_call_operand.vmem [shape: bf16[128,192], index: 6, kind: input, shape index: {}]   ;;  %s2651_s7 = inlined_call_operand.vmem [shape: bf16[64,192], index: 7, kind: input, shape index: {}]   ;;  %s2652_s8 = inlined_call_operand.vmem [shape: f32[1,192], index: 8, kind: input, shape index: {}]   ;;  %s2653_s9 = inlined_call_operand.vmem [shape: f32[1,64], index: 9, kind: input, shape index: {}]   ;;  %s2654_s10 = inlined_call_operand.hbm [shape: f32[16,64], index: 10, kind: output, shape index: {}]  }
   0x1   :  { %v2064_v0 = vld [vmem:[%s2647_s3 + $0x4] ss:$8 sps:$4 sm:$0xff]   ;;  %v2069_v1 = vld [vmem:[%s2647_s3] ss:$8 sps:$4 sm:$0xff]   ;;  %116 = vmatprep.mubr.bf16.mxu0 %v2001_v2  ;;  %220 = vmatprep.mubr.bf16.mxu1 %v2001_v2  ;;  %v2084_v5 = vld [vmem:[%s2647_s3 + $0x14] ss:$8 sps:$4 sm:$0xff]  }
   0x2   :  { %188 = vmatprep.subr.bf16.mxu1 %v2064_v0  ;;  %v1829_v3 = vld [vmem:[%s2646_s2 + $0x4] ss:$8 sps:$4 sm:$0xff]   ;;  %v1831_v4 = vld [vmem:[%s2646_s2] ss:$8 sps:$4 sm:$0xff]   ;;  %v2089_v6 = vld [vmem:[%s2647_s3 + $0x10] ss:$8 sps:$4 sm:$0xff]  }
   0x3   :  { %189 = vmatpush1.bf16.msra.mxu1 %v2069_v1  ;;  %84 = vmatprep.subr.bf16.mxu0 %v1829_v3  ;;  %v1835_v7 = vld [vmem:[%s2646_s2 + $0x14] ss:$8 sps:$4 sm:$0xff]   ;;  %v1837_v8 = vld [vmem:[%s2646_s2 + $0x10] ss:$8 sps:$4 sm:$0xff]   ;;  %v2101_v9 = vld [vmem:[%s2647_s3 + $0x24] ss:$8 sps:$4 sm:$0xff]  }
   0x4   :  { %85 = vmatpush1.bf16.msra.mxu0 %v1831_v4  ;;  %190 = vmatprep.subr.bf16.mxu1 %v2084_v5  ;;  %v2107_v10 = vld [vmem:[%s2647_s3 + $0x20] ss:$8 sps:$4 sm:$0xff]   ;;  %v2116_v12 = vld [vmem:[%s2647_s3 + $0x34] ss:$8 sps:$4 sm:$0xff]   ;;  %v2121_v13 = vld [vmem:[%s2647_s3 + $0x30] ss:$8 sps:$4 sm:$0xff]  }
   0x5   :  { %86 = vmatprep.subr.bf16.mxu0 %v1835_v7  ;;  %v1841_v11 = vld [vmem:[%s2644_s0] sm:$0xff]  }
   0x6   :  { %v142_v14 = vld [vmem:[%s2645_s1] sm:$0x3] }
   0x7   :  { %191 = vmatpush1.bf16.msra.mxu1 %v2089_v6  ;;  %v143_v15 = vpack.c.bf16 %v142_v14, %v142_v14 }
   0x8   :  { %192 = vmatprep.subr.bf16.mxu1 %v2101_v9  ;;  %87 = vmatpush1.bf16.msra.mxu0 %v1837_v8 }
   0x9   :  { %267 = vmatprep.subr.bf16.mxu0 %v2064_v0 }
   0xb   :  { %193 = vmatpush1.bf16.msra.mxu1 %v2107_v10  ;;  %1753 = vmatmul.mubr.msk.bf16.vlgmr.msra.gmra.mrb[0].mxu0 %vm80_vm0, %v1841_v11 }
   0xc   :  { %194 = vmatprep.subr.bf16.mxu1 %v2116_v12  ;;  %268 = vmatpush1.bf16.msra.mxu0 %v2069_v1 }
   0xd   :  { %299 = vmatprep.mubr.bf16.mxu0 %v2001_v2  ;;  %269 = vmatprep.subr.bf16.mxu0 %v2084_v5 }
   0xf   :  { %195 = vmatpush1.bf16.msra.mxu1 %v2121_v13 }
  0x10   :  { %351 = vmatprep.subr.bf16.mxu1 %v2064_v0  ;;  %270 = vmatpush1.bf16.msra.mxu0 %v2089_v6 }
  0x11   :  { %15 = vsyncpa [#allocation4], 0  ;;  %271 = vmatprep.subr.bf16.mxu0 %v2101_v9  ;;  %v45_v16 = vlaneseq  ;;  %v43_v19 = vld [vmem:[%s2648_s4] sm:$0x3]  ;;  %s2002_s21 = smov 64   ;;  %vm256_vm2 = vcmask 254976  }
  0x12   :  { %1763 = vmatmul.mubr.msk.bf16.vlgmr.msra.gmra.mrb[0].mxu1 %vm184_vm1, %v143_v15  ;;  %v2171_v38 = vld [vmem:[%s2649_s5] ss:$0 sm:$0xff]  ;;  %vm258_vm3 = vcmask 517376   ;;  %vm423_vm4 = vcmask 259076   ;;  %vm425_vm5 = vcmask 521476   ;;  %vm339_vm6 = vcmask 257026  }
  0x13   :  { %352 = vmatpush1.bf16.msra.mxu1 %v2069_v1  ;;  %383 = vmatprep.mubr.bf16.mxu1 %v2001_v2  ;;  %v2150_v17 = vshrl.u32 %v45_v16, 7  ;;  %vm341_vm7 = vcmask 519426   ;;  %vm507_vm8 = vcmask 261126   ;;  %vm509_vm9 = vcmask 523526  }
  0x14   :  { %353 = vmatprep.subr.bf16.mxu1 %v2084_v5  ;;  %272 = vmatpush1.bf16.msra.mxu0 %v2107_v10  ;;  %vm837_vm10 = vcmask 1041920  }
  0x15   :  { %273 = vmatprep.subr.bf16.mxu0 %v2116_v12  ;;  %v47_v18 = vsub.s32 0, %v2150_v17  ;;  %v51_v20 = vsub.s32 1, %v2150_v17 }
  0x17   :  { %354 = vmatpush1.bf16.msra.mxu1 %v2089_v6  ;;  %v48_v21 = vrot.slane %v43_v19, %v47_v18  ;;  %v52_v23 = vrot.slane %v43_v19, %v51_v20 }
  0x18   :  { %355 = vmatprep.subr.bf16.mxu1 %v2101_v9  ;;  %274 = vmatpush1.bf16.msra.mxu0 %v2121_v13 }
  0x19   :  { %435 = vmatprep.subr.bf16.mxu0 %v2064_v0 }
  0x1b   :  { %356 = vmatpush1.bf16.msra.mxu1 %v2107_v10 }
  0x1c   :  { %357 = vmatprep.subr.bf16.mxu1 %v2116_v12 }
  0x1f   :  { %358 = vmatpush1.bf16.msra.mxu1 %v2121_v13 }
  0x20   :  { %519 = vmatprep.subr.bf16.mxu1 %v2064_v0 }
  0xde   :  { %v118_v22 = vpop.f32.mrb[0].mxu0 }
  0xdf   :  { %v120_v24 = vpop.f32.mrb[1].mxu0  ;;  %v2161_v26 = vadd.f32 %v118_v22, %v48_v21 }
  0xe0   :  { %v122_v25 = vpop.f32.mrb[2].mxu0  ;;  %v2174_v41 = vadd.f32 %v120_v24, %v52_v23 }
  0xe1   :  { %v2163_v27 = vadd.f32 %v122_v25, %v48_v21  ;;  %v124_v28 = vpop.f32.mrb[3].mxu0 }
  0xe2   :  { %v2165_v29 = vadd.f32 %v124_v28, %v52_v23 }
  0xe5   :  { %v222_v30 = vpop.f32.mrb[0].mxu1 }
  0xe6   :  { %v229_v31 = vadd.f32 %v222_v30, %v2161_v26  ;;  %v224_v32 = vpop.f32.mrb[1].mxu1 }
  0xe7   :  { %v226_v33 = vpop.f32.mrb[2].mxu1  ;;  %v236_v39 = vadd.f32 %v2171_v38, %v224_v32 }
  0xe8   :  { %v1764_v34 = vmul.f32 -1.442695, %v229_v31  ;;  %v227_v35 = vpop.f32.mrb[3].mxu1 }
  0xea   :  { %1881 = vpow2.f32 %v1764_v34 }
  0xf4   :  { %v1882_v36 = vpop.eup %1881 }
  0xf5   :  { %v233_v37 = vadd.f32 1.0, %v1882_v36 }
  0xf7   :  { %1883 = vrcp.f32 %v233_v37 }
 0x101   :  { %v1884_v40 = vpop.eup %1883 }
 0x102   :  { %v237_v42 = vmul.f32 %v1884_v40, %v236_v39  ;;  %v240_v46 = vsub.f32 1.0, %v1884_v40 }
 0x104   :  { %v238_v43 = vadd.f32 %v237_v42, %v2174_v41 }
 0x106   :  { %1885 = vtanh.f32 %v238_v43 }
 0x110   :  { %v1886_v44 = vpop.eup %1885 }
 0x111   :  { %242 = vrot.lane.b32.xlu0 %v1886_v44, %s2002_s21 }
 0x115   :  { %247 = vrot.lane.b32.xlu0 %v142_v14, %s2002_s21 }
 0x183   :  { %v243_v45 = vpop.permute.xlu0 %242 }
 0x184   :  { %v245_v48 = vmul.f32 %v243_v45, %v240_v46 }
 0x187   :  { %v248_v47 = vpop.permute.xlu0 %247 }
 0x188   :  { %v250_v49 = vmul.f32 %v1884_v40, %v248_v47 }
 0x18a   :  { %v2179_v50 = vadd.f32 %v250_v49, %v245_v48 }
 0x18c   :  { %v260_v51 = vpack.c.bf16 %v2179_v50, %v2179_v50  ;;  %v331_v14 = vrot.slane %v2179_v50, 6 }
 0x18e   :  { %262 = vrot.lane.b32.xlu1 %v260_v51, %s2002_s21 }
 0x200   :  { %v263_v52 = vpop.permute.xlu1 %262 }
 0x201   :  { %1765 = vmatmul.mubr.msk.bf16.vlgmr.msra.gmra.mrb[4].mxu0 %vm184_vm1, %v263_v52 }
 0x202   :  { %436 = vmatpush1.bf16.msra.mxu0 %v2069_v1  ;;  %467 = vmatprep.mubr.bf16.mxu0 %v2001_v2 }
 0x203   :  { %437 = vmatprep.subr.bf16.mxu0 %v2084_v5 }
 0x206   :  { %438 = vmatpush1.bf16.msra.mxu0 %v2089_v6 }
 0x207   :  { %439 = vmatprep.subr.bf16.mxu0 %v2101_v9 }
 0x20a   :  { %440 = vmatpush1.bf16.msra.mxu0 %v2107_v10 }
 0x20b   :  { %441 = vmatprep.subr.bf16.mxu0 %v2116_v12 }
 0x20e   :  { %442 = vmatpush1.bf16.msra.mxu0 %v2121_v13 }
 0x20f   :  { %594 = vmatprep.subr.bf16.mxu0 %v2064_v0 }
 0x2d4   :  { %v301_v53 = vpop.f32.mrb[4].mxu0 }
 0x2d5   :  { %v309_v54 = vrot.slane %v301_v53, 6  ;;  %v303_v55 = vpop.f32.mrb[5].mxu0 }
 0x2d6   :  { %v305_v56 = vpop.f32.mrb[6].mxu0  ;;  %v318_v62 = vadd.f32 %v2171_v38, %v303_v55 }
 0x2d7   :  { %v311_v57 = vadd.f32 %v309_v54, %v2161_v26  ;;  %v306_v58 = vpop.f32.mrb[7].mxu0 }
 0x2d8   :  { %v320_v63 = vrot.slane %v318_v62, 6 }
 0x2d9   :  { %v1766_v59 = vmul.f32 -1.442695, %v311_v57 }
 0x2db   :  { %1887 = vpow2.f32 %v1766_v59 }
 0x2e5   :  { %v1888_v60 = vpop.eup %1887 }
 0x2e6   :  { %v315_v61 = vadd.f32 1.0, %v1888_v60 }
 0x2e8   :  { %1889 = vrcp.f32 %v315_v61 }
 0x2f2   :  { %v1890_v3 = vpop.eup %1889 }
 0x2f3   :  { %v322_v4 = vmul.f32 %v1890_v3, %v320_v63  ;;  %v325_v11 = vsub.f32 1.0, %v1890_v3  ;;  %v333_v16 = vmul.f32 %v1890_v3, %v331_v14 }
 0x2f5   :  { %v323_v7 = vadd.f32 %v322_v4, %v2174_v41 }
 0x2f7   :  { %1891 = vtanh.f32 %v323_v7 }
 0x301   :  { %v1892_v8 = vpop.eup %1891 }
 0x302   :  { %327 = vrot.lane.b32.xlu1 %v1892_v8, %s2002_s21 }
 0x374   :  { %v328_v15 = vpop.permute.xlu1 %327 }
 0x375   :  { %v330_v19 = vmul.f32 %v328_v15, %v325_v11 }
 0x377   :  { %v2199_v21 = vadd.f32 %v333_v16, %v330_v19 }
 0x379   :  { %v343_v22 = vpack.c.bf16 %v2199_v21, %v2199_v21  ;;  %v415_v46 = vrot.slane %v2199_v21, 6 }
 0x37b   :  { %v345_v23 = vrot.slane %v343_v22, 1 }
 0x37d   :  { %346 = vrot.lane.b32.xlu0 %v345_v23, %s2002_s21 }
 0x3ef   :  { %v347_v24 = vpop.permute.xlu0 %346 }
 0x3f0   :  { %1767 = vmatmul.mubr.msk.bf16.vlgmr.msra.gmra.mrb[4].mxu1 %vm184_vm1, %v347_v24 }
 0x3f1   :  { %520 = vmatpush1.bf16.msra.mxu1 %v2069_v1  ;;  %551 = vmatprep.mubr.bf16.mxu1 %v2001_v2 }
 0x3f2   :  { %521 = vmatprep.subr.bf16.mxu1 %v2084_v5 }
 0x3f5   :  { %522 = vmatpush1.bf16.msra.mxu1 %v2089_v6 }
 0x3f6   :  { %523 = vmatprep.subr.bf16.mxu1 %v2101_v9 }
 0x3f9   :  { %524 = vmatpush1.bf16.msra.mxu1 %v2107_v10 }
 0x3fa   :  { %525 = vmatprep.subr.bf16.mxu1 %v2116_v12 }
 0x3fd   :  { %526 = vmatpush1.bf16.msra.mxu1 %v2121_v13 }
 0x3fe   :  { %676 = vmatprep.subr.bf16.mxu1 %v2064_v0 }
 0x4c3   :  { %v385_v25 = vpop.f32.mrb[4].mxu1 }
 0x4c4   :  { %v393_v28 = vrot.slane %v385_v25, 4  ;;  %v387_v30 = vpop.f32.mrb[5].mxu1 }
 0x4c5   :  { %v389_v31 = vpop.f32.mrb[6].mxu1  ;;  %v402_v37 = vadd.f32 %v2171_v38, %v387_v30 }
 0x4c6   :  { %v395_v32 = vadd.f32 %v393_v28, %v2161_v26  ;;  %v390_v33 = vpop.f32.mrb[7].mxu1 }
 0x4c7   :  { %v404_v39 = vrot.slane %v402_v37, 4 }
 0x4c8   :  { %v1768_v34 = vmul.f32 -1.442695, %v395_v32 }
 0x4ca   :  { %1893 = vpow2.f32 %v1768_v34 }
 0x4d4   :  { %v1894_v35 = vpop.eup %1893 }
 0x4d5   :  { %v399_v36 = vadd.f32 1.0, %v1894_v35 }
 0x4d7   :  { %1895 = vrcp.f32 %v399_v36 }
 0x4e1   :  { %v1896_v40 = vpop.eup %1895 }
 0x4e2   :  { %v406_v42 = vmul.f32 %v1896_v40, %v404_v39  ;;  %v409_v45 = vsub.f32 1.0, %v1896_v40  ;;  %v417_v48 = vmul.f32 %v1896_v40, %v415_v46 }
 0x4e4   :  { %v407_v43 = vadd.f32 %v406_v42, %v2174_v41 }
 0x4e6   :  { %1897 = vtanh.f32 %v407_v43 }
 0x4f0   :  { %v1898_v44 = vpop.eup %1897 }
 0x4f1   :  { %411 = vrot.lane.b32.xlu1 %v1898_v44, %s2002_s21 }
 0x563   :  { %v412_v47 = vpop.permute.xlu1 %411 }
 0x564   :  { %v414_v49 = vmul.f32 %v412_v47, %v409_v45 }
 0x566   :  { %v2219_v51 = vadd.f32 %v417_v48, %v414_v49 }
 0x568   :  { %v427_v52 = vpack.c.bf16 %v2219_v51, %v2219_v51 }
 0x56a   :  { %v429_v53 = vrot.slane %v427_v52, 2 }
 0x56c   :  { %430 = vrot.lane.b32.xlu0 %v429_v53, %s2002_s21 }
 0x5de   :  { %v431_v54 = vpop.permute.xlu0 %430 }
 0x5df   :  { %1769 = vmatmul.mubr.msk.bf16.vlgmr.msra.gmra.mrb[8].mxu0 %vm184_vm1, %v431_v54 }
 0x5e0   :  { %595 = vmatpush1.bf16.msra.mxu0 %v2069_v1  ;;  %626 = vmatprep.mubr.bf16.mxu0 %v2001_v2 }
 0x5e1   :  { %596 = vmatprep.subr.bf16.mxu0 %v2084_v5 }
 0x5e4   :  { %597 = vmatpush1.bf16.msra.mxu0 %v2089_v6 }
 0x5e5   :  { %598 = vmatprep.subr.bf16.mxu0 %v2101_v9 }
 0x5e8   :  { %599 = vmatpush1.bf16.msra.mxu0 %v2107_v10 }
 0x5e9   :  { %600 = vmatprep.subr.bf16.mxu0 %v2116_v12 }
 0x5ec   :  { %601 = vmatpush1.bf16.msra.mxu0 %v2121_v13 }
 0x5ed   :  { %758 = vmatprep.subr.bf16.mxu0 %v2064_v0 }
 0x6b2   :  { %v469_v55 = vpop.f32.mrb[8].mxu0 }
 0x6b3   :  { %v477_v56 = vrot.slane %v469_v55, 2  ;;  %v471_v57 = vpop.f32.mrb[9].mxu0 }
 0x6b4   :  { %v473_v58 = vpop.f32.mrb[10].mxu0  ;;  %v486_v3 = vadd.f32 %v2171_v38, %v471_v57 }
 0x6b5   :  { %v479_v59 = vadd.f32 %v477_v56, %v2161_v26  ;;  %v474_v60 = vpop.f32.mrb[11].mxu0  ;;  %v499_v26 = vrot.slane %v2219_v51, 6 }
 0x6b6   :  { %v488_v4 = vrot.slane %v486_v3, 2 }
 0x6b7   :  { %v1770_v61 = vmul.f32 -1.442695, %v479_v59 }
 0x6b9   :  { %1899 = vpow2.f32 %v1770_v61 }
 0x6c3   :  { %v1900_v62 = vpop.eup %1899 }
 0x6c4   :  { %v483_v63 = vadd.f32 1.0, %v1900_v62 }
 0x6c6   :  { %1901 = vrcp.f32 %v483_v63 }
 0x6d0   :  { %v1902_v7 = vpop.eup %1901 }
 0x6d1   :  { %v490_v8 = vmul.f32 %v1902_v7, %v488_v4  ;;  %v493_v14 = vsub.f32 1.0, %v1902_v7  ;;  %v501_v16 = vmul.f32 %v1902_v7, %v499_v26 }
 0x6d3   :  { %v491_v11 = vadd.f32 %v490_v8, %v2174_v41 }
 0x6d5   :  { %1903 = vtanh.f32 %v491_v11 }
 0x6df   :  { %v1904_v0 = vpop.eup %1903 }
 0x6e0   :  { %495 = vrot.lane.b32.xlu1 %v1904_v0, %s2002_s21 }
 0x752   :  { %v496_v15 = vpop.permute.xlu1 %495 }
 0x753   :  { %v498_v19 = vmul.f32 %v496_v15, %v493_v14 }
 0x755   :  { %v2239_v22 = vadd.f32 %v501_v16, %v498_v19 }
 0x757   :  { %v511_v23 = vpack.c.bf16 %v2239_v22, %v2239_v22  ;;  %v577_v44 = vrot.slane %v2239_v22, 6 }
 0x759   :  { %v513_v24 = vrot.slane %v511_v23, 3 }
 0x75b   :  { %514 = vrot.lane.b32.xlu0 %v513_v24, %s2002_s21 }
 0x7cd   :  { %v515_v25 = vpop.permute.xlu0 %514 }
 0x7ce   :  { %1771 = vmatmul.mubr.msk.bf16.vlgmr.msra.gmra.mrb[8].mxu1 %vm184_vm1, %v515_v25 }
 0x7cf   :  { %677 = vmatpush1.bf16.msra.mxu1 %v2069_v1  ;;  %708 = vmatprep.mubr.bf16.mxu1 %v2001_v2 }
 0x7d0   :  { %678 = vmatprep.subr.bf16.mxu1 %v2084_v5 }
 0x7d3   :  { %679 = vmatpush1.bf16.msra.mxu1 %v2089_v6 }
 0x7d4   :  { %680 = vmatprep.subr.bf16.mxu1 %v2101_v9 }
 0x7d7   :  { %681 = vmatpush1.bf16.msra.mxu1 %v2107_v10 }
 0x7d8   :  { %682 = vmatprep.subr.bf16.mxu1 %v2116_v12 }
 0x7db   :  { %683 = vmatpush1.bf16.msra.mxu1 %v2121_v13 }
 0x8a1   :  { %v553_v41 = vpop.f32.mrb[8].mxu1 }
 0x8a2   :  { %v560_v28 = vadd.f32 %v553_v41, %v2163_v27  ;;  %v555_v30 = vpop.f32.mrb[9].mxu1 }
 0x8a3   :  { %v557_v31 = vpop.f32.mrb[10].mxu1  ;;  %v567_v36 = vadd.f32 %v2171_v38, %v555_v30 }
 0x8a4   :  { %v1772_v32 = vmul.f32 -1.442695, %v560_v28  ;;  %v558_v33 = vpop.f32.mrb[11].mxu1 }
 0x8a6   :  { %1905 = vpow2.f32 %v1772_v32 }
 0x8b0   :  { %v1906_v34 = vpop.eup %1905 }
 0x8b1   :  { %v564_v35 = vadd.f32 1.0, %v1906_v34 }
 0x8b3   :  { %1907 = vrcp.f32 %v564_v35 }
 0x8bd   :  { %v1908_v37 = vpop.eup %1907 }
 0x8be   :  { %v568_v39 = vmul.f32 %v1908_v37, %v567_v36  ;;  %v571_v43 = vsub.f32 1.0, %v1908_v37  ;;  %v579_v46 = vmul.f32 %v1908_v37, %v577_v44 }
 0x8c0   :  { %v569_v40 = vadd.f32 %v568_v39, %v2165_v29 }
 0x8c2   :  { %1909 = vtanh.f32 %v569_v40 }
 0x8cc   :  { %v1910_v42 = vpop.eup %1909 }
 0x8cd   :  { %573 = vrot.lane.b32.xlu1 %v1910_v42, %s2002_s21 }
 0x93f   :  { %v574_v45 = vpop.permute.xlu1 %573 }
 0x940   :  { %v576_v47 = vmul.f32 %v574_v45, %v571_v43 }
 0x942   :  { %v2258_v48 = vadd.f32 %v579_v46, %v576_v47 }
 0x944   :  { %v587_v49 = vpack.c.bf16 %v2258_v48, %v2258_v48  ;;  %v658_v62 = vrot.slane %v2258_v48, 6 }
 0x946   :  { %589 = vrot.lane.b32.xlu0 %v587_v49, %s2002_s21 }
 0x9b8   :  { %v590_v52 = vpop.permute.xlu0 %589 }
 0x9b9   :  { %1773 = vmatmul.mubr.msk.bf16.vlgmr.msra.gmra.mrb[12].mxu0 %vm184_vm1, %v590_v52 }
 0x9ba   :  { %759 = vmatpush1.bf16.msra.mxu0 %v2069_v1  ;;  %790 = vmatprep.mubr.bf16.mxu0 %v2001_v2 }
 0x9bb   :  { %760 = vmatprep.subr.bf16.mxu0 %v2084_v5 }
 0x9be   :  { %761 = vmatpush1.bf16.msra.mxu0 %v2089_v6 }
 0x9bf   :  { %762 = vmatprep.subr.bf16.mxu0 %v2101_v9 }
 0x9c2   :  { %763 = vmatpush1.bf16.msra.mxu0 %v2107_v10 }
 0x9c3   :  { %764 = vmatprep.subr.bf16.mxu0 %v2116_v12 }
 0x9c6   :  { %765 = vmatpush1.bf16.msra.mxu0 %v2121_v13 }
 0xa8c   :  { %v628_v53 = vpop.f32.mrb[12].mxu0 }
 0xa8d   :  { %v636_v54 = vrot.slane %v628_v53, 6  ;;  %v630_v55 = vpop.f32.mrb[13].mxu0 }
 0xa8e   :  { %v632_v56 = vpop.f32.mrb[14].mxu0  ;;  %v645_v6 = vadd.f32 %v2171_v38, %v630_v55 }
 0xa8f   :  { %v638_v1 = vadd.f32 %v636_v54, %v2163_v27  ;;  %v633_v57 = vpop.f32.mrb[15].mxu0 }
 0xa90   :  { %v647_v9 = vrot.slane %v645_v6, 6 }
 0xa91   :  { %v1774_v58 = vmul.f32 -1.442695, %v638_v1 }
 0xa93   :  { %1911 = vpow2.f32 %v1774_v58 }
 0xa9d   :  { %v1912_v5 = vpop.eup %1911 }
 0xa9e   :  { %v642_v59 = vadd.f32 1.0, %v1912_v5 }
 0xaa0   :  { %1913 = vrcp.f32 %v642_v59 }
 0xaaa   :  { %v1914_v10 = vpop.eup %1913 }
 0xaab   :  { %v649_v60 = vmul.f32 %v1914_v10, %v647_v9  ;;  %v652_v61 = vsub.f32 1.0, %v1914_v10  ;;  %v660_v3 = vmul.f32 %v1914_v10, %v658_v62 }
 0xaad   :  { %v650_v12 = vadd.f32 %v649_v60, %v2165_v29 }
 0xaaf   :  { %1915 = vtanh.f32 %v650_v12 }
 0xab9   :  { %v1916_v13 = vpop.eup %1915 }
 0xaba   :  { %654 = vrot.lane.b32.xlu1 %v1916_v13, %s2002_s21 }
 0xb2c   :  { %v655_v63 = vpop.permute.xlu1 %654 }
 0xb2d   :  { %v657_v4 = vmul.f32 %v655_v63, %v652_v61 }
 0xb2f   :  { %v2277_v7 = vadd.f32 %v660_v3, %v657_v4 }
 0xb31   :  { %v668_v8 = vpack.c.bf16 %v2277_v7, %v2277_v7  ;;  %v740_v36 = vrot.slane %v2277_v7, 6 }
 0xb33   :  { %v670_v11 = vrot.slane %v668_v8, 1 }
 0xb35   :  { %671 = vrot.lane.b32.xlu0 %v670_v11, %s2002_s21 }
 0xba7   :  { %v672_v0 = vpop.permute.xlu0 %671 }
 0xba8   :  { %1775 = vmatmul.mubr.msk.bf16.vlgmr.msra.gmra.mrb[12].mxu1 %vm184_vm1, %v672_v0  ;;  %v1845_v0 = vld [vmem:[%s2650_s6] ss:$8 sps:$4 sm:$0xff]  }
 0xba9   :  { %1024 = vmatprep.mubr.bf16.mxu1 %v2001_v2 }
 0xc7b   :  { %v710_v14 = vpop.f32.mrb[12].mxu1 }
 0xc7c   :  { %v718_v26 = vrot.slane %v710_v14, 4  ;;  %v712_v15 = vpop.f32.mrb[13].mxu1  ;;  %v1847_v14 = vld [vmem:[%s2650_s6 + $0x4] ss:$8 sps:$4 sm:$0xff]  }
 0xc7d   :  { %v714_v16 = vpop.f32.mrb[14].mxu1  ;;  %v727_v28 = vadd.f32 %v2171_v38, %v712_v15  ;;  %992 = vmatprep.subr.bf16.mxu1 %v1847_v14  ;;  %v2344_v15 = vld [vmem:[%s2651_s7 + $0x4] ss:$8 sps:$4 sm:$0xff]  }
 0xc7e   :  { %v720_v19 = vadd.f32 %v718_v26, %v2163_v27  ;;  %v715_v23 = vpop.f32.mrb[15].mxu1  ;;  %v1850_v26 = vld [vmem:[%s2650_s6 + $0x14] ss:$8 sps:$4 sm:$0xff]   ;;  %993 = vmatpush1.bf16.msra.mxu1 %v1845_v0  ;;  %v1848_v16 = vld [vmem:[%s2650_s6 + $0x10] ss:$8 sps:$4 sm:$0xff]   ;;  %1096 = vmatprep.subr.bf16.mxu0 %v2344_v15 }
 0xc7f   :  { %v729_v30 = vrot.slane %v727_v28, 4  ;;  %994 = vmatprep.subr.bf16.mxu1 %v1850_v26  ;;  %v1853_v23 = vld [vmem:[%s2650_s6 + $0x24] ss:$8 sps:$4 sm:$0xff]   ;;  %v1854_v28 = vld [vmem:[%s2650_s6 + $0x30] ss:$8 sps:$4 sm:$0xff]  }
 0xc80   :  { %v1776_v24 = vmul.f32 -1.442695, %v720_v19  ;;  %v2352_v19 = vld [vmem:[%s2651_s7] ss:$8 sps:$4 sm:$0xff]  }
 0xc82   :  { %1917 = vpow2.f32 %v1776_v24  ;;  %995 = vmatpush1.bf16.msra.mxu1 %v1848_v16  ;;  %v1851_v24 = vld [vmem:[%s2650_s6 + $0x20] ss:$8 sps:$4 sm:$0xff]  }
 0xc83   :  { %996 = vmatprep.subr.bf16.mxu1 %v1853_v23 }
 0xc86   :  { %997 = vmatpush1.bf16.msra.mxu1 %v1851_v24 }
 0xc8c   :  { %v1918_v25 = vpop.eup %1917 }
 0xc8d   :  { %v724_v41 = vadd.f32 1.0, %v1918_v25 }
 0xc8f   :  { %1919 = vrcp.f32 %v724_v41  ;;  %v1856_v41 = vld [vmem:[%s2650_s6 + $0x34] ss:$8 sps:$4 sm:$0xff]  }
 0xc90   :  { %998 = vmatprep.subr.bf16.mxu1 %v1856_v41 }
 0xc91   :  { %999 = vmatpush1.bf16.msra.mxu1 %v1854_v28 }
 0xc99   :  { %v1920_v31 = vpop.eup %1919 }
 0xc9a   :  { %v731_v32 = vmul.f32 %v1920_v31, %v729_v30  ;;  %v734_v35 = vsub.f32 1.0, %v1920_v31  ;;  %v742_v39 = vmul.f32 %v1920_v31, %v740_v36  ;;  %v1861_v31 = vld [vmem:[%s2650_s6 + $0x44] ss:$8 sps:$4 sm:$0xff]   ;;  %v1867_v36 = vld [vmem:[%s2650_s6 + $0x54] ss:$8 sps:$4 sm:$0xff]  }
 0xc9b   :  { %1000 = vmatprep.subr.bf16.mxu1 %v1861_v31 }
 0xc9c   :  { %v732_v33 = vadd.f32 %v731_v32, %v2165_v29  ;;  %v1859_v32 = vld [vmem:[%s2650_s6 + $0x40] ss:$8 sps:$4 sm:$0xff]  }
 0xc9d   :  { %1001 = vmatpush1.bf16.msra.mxu1 %v1859_v32 }
 0xc9e   :  { %1921 = vtanh.f32 %v732_v33  ;;  %v2379_v33 = vld [vmem:[%s2651_s7 + $0x14] ss:$8 sps:$4 sm:$0xff]   ;;  %1002 = vmatprep.subr.bf16.mxu1 %v1867_v36 }
 0xca8   :  { %v1922_v34 = vpop.eup %1921 }
 0xca9   :  { %736 = vrot.lane.b32.xlu1 %v1922_v34, %s2002_s21 }
 0xd1b   :  { %v737_v37 = vpop.permute.xlu1 %736 }
 0xd1c   :  { %v739_v40 = vmul.f32 %v737_v37, %v734_v35  ;;  %v1865_v35 = vld [vmem:[%s2650_s6 + $0x50] ss:$8 sps:$4 sm:$0xff]  }
 0xd1d   :  { %v2390_v37 = vld [vmem:[%s2651_s7 + $0x10] ss:$8 sps:$4 sm:$0xff]   ;;  %1003 = vmatpush1.bf16.msra.mxu1 %v1865_v35 }
 0xd1e   :  { %v743_v42 = vadd.f32 %v742_v39, %v739_v40  ;;  %v2398_v39 = vld [vmem:[%s2651_s7 + $0x24] ss:$8 sps:$4 sm:$0xff]  }
 0xd20   :  { %v750_v43 = vpack.c.bf16 %v743_v42, %v743_v42  ;;  %v822_v58 = vrot.slane %v743_v42, 6 }
 0xd22   :  { %v752_v44 = vrot.slane %v750_v43, 2  ;;  %v1873_v43 = vld [vmem:[%s2650_s6 + $0x64] ss:$8 sps:$4 sm:$0xff]  }
 0xd23   :  { %1004 = vmatprep.subr.bf16.mxu1 %v1873_v43 }
 0xd24   :  { %753 = vrot.lane.b32.xlu0 %v752_v44, %s2002_s21  ;;  %v2409_v44 = vld [vmem:[%s2651_s7 + $0x20] ss:$8 sps:$4 sm:$0xff]  }
 0xd28   :  { %253 = vrot.lane.b32.xlu0 %v2179_v50, %s2002_s21 }
 0xd2c   :  { %420 = vrot.lane.b32.xlu0 %v2219_v51, %s2002_s21 }
 0xd30   :  { %582 = vrot.lane.b32.xlu0 %v2258_v48, %s2002_s21 }
 0xd34   :  { %745 = vrot.lane.b32.xlu0 %v743_v42, %s2002_s21  ;;  %v1871_v42 = vld [vmem:[%s2650_s6 + $0x60] ss:$8 sps:$4 sm:$0xff]  }
 0xd35   :  { %1005 = vmatpush1.bf16.msra.mxu1 %v1871_v42 }
 0xd96   :  { %v754_v45 = vpop.permute.xlu0 %753 }
 0xd97   :  { %1777 = vmatmul.mubr.msk.bf16.vlgmr.msra.gmra.mrb[16].mxu0 %vm184_vm1, %v754_v45  ;;  %v2416_v45 = vld [vmem:[%s2651_s7 + $0x34] ss:$8 sps:$4 sm:$0xff]  }
 0xd98   :  { %1128 = vmatprep.mubr.bf16.mxu0 %v2001_v2  ;;  %1097 = vmatpush1.bf16.msra.mxu0 %v2352_v19 }
 0xd99   :  { %1098 = vmatprep.subr.bf16.mxu0 %v2379_v33 }
 0xd9a   :  { %v254_v46 = vpop.permute.xlu0 %253 }
 0xd9b   :  { %257 = vst.msk [vmem:[#allocation2] sm:$0x3] %vm256_vm2, %v254_v46 }
 0xd9c   :  { %259 = vst.msk [vmem:[#allocation2 + $0xe] sm:$0x3] %vm258_vm3, %v254_v46  ;;  %1099 = vmatpush1.bf16.msra.mxu0 %v2390_v37  ;;  %v1879_v46 = vld [vmem:[%s2650_s6 + $0x74] ss:$8 sps:$4 sm:$0xff]  }
 0xd9d   :  { %1100 = vmatprep.subr.bf16.mxu0 %v2398_v39  ;;  %1006 = vmatprep.subr.bf16.mxu1 %v1879_v46 }
 0xd9e   :  { %v421_v50 = vpop.permute.xlu0 %420 }
 0xd9f   :  { %424 = vst.msk [vmem:[#allocation2] sm:$0x30] %vm423_vm4, %v421_v50 }
 0xda0   :  { %426 = vst.msk [vmem:[#allocation2 + $0x6] sm:$0x30] %vm425_vm5, %v421_v50  ;;  %1101 = vmatpush1.bf16.msra.mxu0 %v2409_v44  ;;  %v2425_v50 = vld [vmem:[%s2651_s7 + $0x30] ss:$8 sps:$4 sm:$0xff]  }
 0xda1   :  { %1102 = vmatprep.subr.bf16.mxu0 %v2416_v45 }
 0xda4   :  { %1103 = vmatpush1.bf16.msra.mxu0 %v2425_v50 }
 0xda5   :  { %1173 = vmatprep.subr.bf16.mxu0 %v2344_v15 }
 0xe6a   :  { %v792_v51 = vpop.f32.mrb[16].mxu0 }
 0xe6b   :  { %v800_v47 = vrot.slane %v792_v51, 2  ;;  %v794_v48 = vpop.f32.mrb[17].mxu0  ;;  %v1796_v51 = vld [vmem:[%s2645_s1 + $0x2] sm:$0x3] }
 0xe6c   :  { %v796_v49 = vpop.f32.mrb[18].mxu0  ;;  %v809_v1 = vadd.f32 %v2171_v38, %v794_v48  ;;  %v1052_v48 = vpack.c.bf16 %v1796_v51, %v1796_v51 }
 0xe6d   :  { %v802_v52 = vadd.f32 %v800_v47, %v2163_v27  ;;  %v797_v53 = vpop.f32.mrb[19].mxu0  ;;  %v583_v27 = vpop.permute.xlu0 %582  ;;  %v1877_v47 = vld [vmem:[%s2650_s6 + $0x70] ss:$8 sps:$4 sm:$0xff]  }
 0xe6e   :  { %v811_v57 = vrot.slane %v809_v1, 2  ;;  %1007 = vmatpush1.bf16.msra.mxu1 %v1877_v47  ;;  %1805 = vmatmul.mubr.msk.bf16.vlgmr.msra.gmra.mrb[20].mxu0 %vm184_vm1, %v1052_v48 }
 0xe6f   :  { %v1778_v54 = vmul.f32 -1.442695, %v802_v52  ;;  %1255 = vmatprep.subr.bf16.mxu1 %v2344_v15  ;;  %1174 = vmatpush1.bf16.msra.mxu0 %v2352_v19 }
 0xe70   :  { %1205 = vmatprep.mubr.bf16.mxu0 %v2001_v2  ;;  %1175 = vmatprep.subr.bf16.mxu0 %v2379_v33 }
 0xe71   :  { %1923 = vpow2.f32 %v1778_v54  ;;  %v746_v61 = vpop.permute.xlu0 %745 }
 0xe73   :  { %1176 = vmatpush1.bf16.msra.mxu0 %v2390_v37 }
 0xe74   :  { %1177 = vmatprep.subr.bf16.mxu0 %v2398_v39 }
 0xe77   :  { %1178 = vmatpush1.bf16.msra.mxu0 %v2409_v44 }
 0xe78   :  { %1179 = vmatprep.subr.bf16.mxu0 %v2416_v45 }
 0xe7b   :  { %v1924_v55 = vpop.eup %1923  ;;  %1180 = vmatpush1.bf16.msra.mxu0 %v2425_v50 }
 0xe7c   :  { %v806_v56 = vadd.f32 1.0, %v1924_v55  ;;  %1337 = vmatprep.subr.bf16.mxu0 %v2344_v15 }
 0xe7e   :  { %1925 = vrcp.f32 %v806_v56 }
 0xe88   :  { %v1926_v5 = vpop.eup %1925 }
 0xe89   :  { %v813_v59 = vmul.f32 %v1926_v5, %v811_v57  ;;  %v824_v6 = vmul.f32 %v1926_v5, %v822_v58  ;;  %v816_v38 = vsub.f32 1.0, %v1926_v5 }
 0xe8b   :  { %v814_v9 = vadd.f32 %v813_v59, %v2165_v29 }
 0xe8d   :  { %1927 = vtanh.f32 %v814_v9 }
 0xe97   :  { %v1928_v10 = vpop.eup %1927 }
 0xe98   :  { %818 = vrot.lane.b32.xlu1 %v1928_v10, %s2002_s21  ;;  %v900_v10 = vld [vmem:[%s2652_s8] sm:$0x3] }
 0xe9c   :  { %336 = vrot.lane.b32.xlu1 %v2199_v21, %s2002_s21 }
 0xea0   :  { %504 = vrot.lane.b32.xlu1 %v2239_v22, %s2002_s21 }
 0xea4   :  { %663 = vrot.lane.b32.xlu1 %v2277_v7, %s2002_s21 }
 0xf0a   :  { %v819_v60 = vpop.permute.xlu1 %818 }
 0xf0b   :  { %v821_v12 = vmul.f32 %v819_v60, %v816_v38 }
 0xf0d   :  { %v825_v29 = vadd.f32 %v824_v6, %v821_v12 }
 0xf0e   :  { %v337_v13 = vpop.permute.xlu1 %336 }
 0xf0f   :  { %340 = vst.msk [vmem:[#allocation2] sm:$0xc] %vm339_vm6, %v337_v13  ;;  %827 = vrot.lane.b32.xlu1 %v825_v29, %s2002_s21  ;;  %v909_v29 = vrot.slane %v900_v10, %v51_v20 }
 0xf10   :  { %342 = vst.msk [vmem:[#allocation2 + $0xa] sm:$0xc] %vm341_vm7, %v337_v13 }
 0xf11   :  { %748 = vst.msk [vmem:[#allocation2 + $0x8] sm:$0x30] %vm423_vm4, %v746_v61 }
 0xf12   :  { %749 = vst.msk [vmem:[#allocation2 - $0x2] sm:$0x30] %vm425_vm5, %v746_v61  ;;  %v505_v21 = vpop.permute.xlu1 %504 }
 0xf13   :  { %508 = vst.msk [vmem:[#allocation2] sm:$0xc0] %vm507_vm8, %v505_v21 }
 0xf14   :  { %510 = vst.msk [vmem:[#allocation2 + $0x2] sm:$0xc0] %vm509_vm9, %v505_v21 }
 0xf15   :  { %585 = vst.msk [vmem:[#allocation2 + $0x8] sm:$0x3] %vm256_vm2, %v583_v27 }
 0xf16   :  { %586 = vst.msk [vmem:[#allocation2 + $0x6] sm:$0x3] %vm258_vm3, %v583_v27  ;;  %v664_v22 = vpop.permute.xlu1 %663  ;;  %v905_v27 = vrot.slane %v900_v10, %v47_v18  ;;  %v2480_v18 = vld [vmem:[%s2653_s9] ss:$0 sm:$0xff]  ;;  %s2003_s9 = smov [#allocation3]  }
 0xf17   :  { %666 = vst.msk [vmem:[#allocation2 + $0x8] sm:$0xc] %vm339_vm6, %v664_v22 }
 0xf18   :  { %667 = vst.msk [vmem:[#allocation2 + $0x2] sm:$0xc] %vm341_vm7, %v664_v22  ;;  %v839_v62 = vld [vmem:[#allocation2 + $0xc] sm:$0x3] }
 0xf19   :  { %841 = vrot.lane.b32.xlu1 %v839_v62, %s2002_s21 }
 0xf1c   :  { %v851_v63 = vld [vmem:[#allocation2 + $0x8] sm:$0x3] }
 0xf1d   :  { %853 = vrot.lane.b32.xlu1 %v851_v63, %s2002_s21 }
 0xf1e   :  { %v845_v8 = vld [vmem:[#allocation2 + $0xa] sm:$0x3] }
 0xf41   :  { %v1130_v5 = vpop.f32.mrb[20].mxu0 }
 0xf42   :  { %v1132_v59 = vpop.f32.mrb[21].mxu0 }
 0xf43   :  { %v1134_v6 = vpop.f32.mrb[22].mxu0  ;;  %v1144_v17 = vadd.f32 %v2480_v18, %v1132_v59 }
 0xf44   :  { %v1135_v9 = vpop.f32.mrb[23].mxu0 }
 0xf81   :  { %v828_v3 = vpop.permute.xlu1 %827 }
 0xf82   :  { %830 = vst.msk [vmem:[#allocation2 + $0x8] sm:$0xc0] %vm507_vm8, %v828_v3 }
 0xf83   :  { %831 = vst.msk [vmem:[#allocation2 - $0x6] sm:$0xc0] %vm509_vm9, %v828_v3 }
 0xf89   :  { %v832_v4 = vld [vmem:[#allocation2 + $0xe] sm:$0x3] }
 0xf8a   :  { %834 = vrot.lane.b32.xlu0 %v832_v4, %s2002_s21 }
 0xf8b   :  { %v842_v7 = vpop.permute.xlu1 %841 }
 0xf8c   :  { %844 = vst.msk [vmem:[#allocation2 + $0x2] sm:$0x3] %vm837_vm10, %v842_v7 }
 0xf8e   :  { %847 = vrot.lane.b32.xlu0 %v845_v8, %s2002_s21 }
 0xf8f   :  { %v854_v11 = vpop.permute.xlu1 %853 }
 0xf90   :  { %856 = vst.msk [vmem:[#allocation2 + $0x6] sm:$0x3] %vm837_vm10, %v854_v11 }
 0xf93   :  { %v869_v30 = vld [vmem:[#allocation2 + $0x2] sm:$0x3] }
 0xf97   :  { %v857_v25 = vld [vmem:[#allocation2 + $0x6] sm:$0x3] }
 0xf98   :  { %859 = vrot.lane.b32.xlu0 %v857_v25, %s2002_s21 }
 0xf9c   :  { %871 = vrot.lane.b32.xlu0 %v869_v30, %s2002_s21 }
 0xffc   :  { %v835_v34 = vpop.permute.xlu0 %834 }
 0xffd   :  { %838 = vst.msk [vmem:[#allocation2] sm:$0x3] %vm837_vm10, %v835_v34 }
0x1000   :  { %v848_v40 = vpop.permute.xlu0 %847 }
0x1001   :  { %850 = vst.msk [vmem:[#allocation2 + $0x4] sm:$0x3] %vm837_vm10, %v848_v40 }
0x1004   :  { %v875_v53 = vld [vmem:[#allocation2] sm:$0x3] }
0x1008   :  { %v863_v49 = vld [vmem:[#allocation2 + $0x4] sm:$0x3] }
0x1009   :  { %865 = vrot.lane.b32.xlu1 %v863_v49, %s2002_s21  ;;  %v881_v1 = vld [vmem:[#allocation2] sm:$0xff] }
0x100a   :  { %v860_v52 = vpop.permute.xlu0 %859 }
0x100b   :  { %862 = vst.msk [vmem:[#allocation2 + $0x8] sm:$0x3] %vm837_vm10, %v860_v52 }
0x100d   :  { %877 = vrot.lane.b32.xlu1 %v875_v53, %s2002_s21 }
0x100e   :  { %v872_v54 = vpop.permute.xlu0 %871 }
0x100f   :  { %874 = vst.msk [vmem:[#allocation2 + $0xc] sm:$0x3] %vm837_vm10, %v872_v54 }
0x1011   :  { %1155 = vrot.lane.b32.xlu1 %v1796_v51, %s2002_s21 }
0x107b   :  { %v866_v55 = vpop.permute.xlu1 %865 }
0x107c   :  { %868 = vst.msk [vmem:[#allocation2 + $0xa] sm:$0x3] %vm837_vm10, %v866_v55 }
0x107f   :  { %v878_v56 = vpop.permute.xlu1 %877 }
0x1080   :  { %880 = vst.msk [vmem:[#allocation2 + $0xe] sm:$0x3] %vm837_vm10, %v878_v56 }
0x1083   :  { %v1156_v14 = vpop.permute.xlu1 %1155 }
0x1087   :  { %v882_v57 = vld [vmem:[#allocation2 + $0x8] sm:$0xff] }
0x1088   :  { %v883_v58 = vpack.c.bf16 %v882_v57, %v881_v1 }
0x108a   :  { %1025 = vmatmul.mubr.bf16.vlgmr.msra.gmra.mrb[16].mxu1 %v883_v58 }
0x108b   :  { %1256 = vmatpush1.bf16.msra.mxu1 %v2352_v19  ;;  %1287 = vmatprep.mubr.bf16.mxu1 %v2001_v2 }
0x108c   :  { %1257 = vmatprep.subr.bf16.mxu1 %v2379_v33 }
0x108f   :  { %1258 = vmatpush1.bf16.msra.mxu1 %v2390_v37 }
0x1090   :  { %1259 = vmatprep.subr.bf16.mxu1 %v2398_v39 }
0x1093   :  { %1260 = vmatpush1.bf16.msra.mxu1 %v2409_v44 }
0x1094   :  { %1261 = vmatprep.subr.bf16.mxu1 %v2416_v45 }
0x1097   :  { %1262 = vmatpush1.bf16.msra.mxu1 %v2425_v50 }
0x1098   :  { %1419 = vmatprep.subr.bf16.mxu1 %v2344_v15 }
0x115d   :  { %v1026_v38 = vpop.f32.mrb[16].mxu1 }
0x115e   :  { %v2468_v60 = vadd.f32 %v1026_v38, %v905_v27  ;;  %v1028_v12 = vpop.f32.mrb[17].mxu1 }
0x115f   :  { %v1030_v13 = vpop.f32.mrb[18].mxu1  ;;  %v2483_v8 = vadd.f32 %v1028_v12, %v909_v29 }
0x1160   :  { %v1137_v61 = vadd.f32 %v1130_v5, %v2468_v60  ;;  %v2473_v21 = vadd.f32 %v1030_v13, %v905_v27  ;;  %v1032_v22 = vpop.f32.mrb[19].mxu1 }
0x1161   :  { %v2475_v62 = vadd.f32 %v1032_v22, %v909_v29 }
0x1162   :  { %v1806_v63 = vmul.f32 -1.442695, %v1137_v61 }
0x1164   :  { %1929 = vpow2.f32 %v1806_v63 }
0x116e   :  { %v1930_v3 = vpop.eup %1929 }
0x116f   :  { %v1141_v4 = vadd.f32 1.0, %v1930_v3 }
0x1171   :  { %1931 = vrcp.f32 %v1141_v4 }
0x117b   :  { %v1932_v20 = vpop.eup %1931 }
0x117c   :  { %v1145_v7 = vmul.f32 %v1932_v20, %v1144_v17  ;;  %v1148_v26 = vsub.f32 1.0, %v1932_v20  ;;  %v1158_v23 = vmul.f32 %v1932_v20, %v1156_v14 }
0x117e   :  { %v1146_v11 = vadd.f32 %v1145_v7, %v2483_v8 }
0x1180   :  { %1933 = vtanh.f32 %v1146_v11 }
0x118a   :  { %v1934_v0 = vpop.eup %1933 }
0x118b   :  { %1150 = vrot.lane.b32.xlu0 %v1934_v0, %s2002_s21 }
0x11fd   :  { %v1151_v16 = vpop.permute.xlu0 %1150 }
0x11fe   :  { %v1153_v24 = vmul.f32 %v1151_v16, %v1148_v26 }
0x1200   :  { %v2487_v25 = vadd.f32 %v1158_v23, %v1153_v24 }
0x1202   :  { %v1166_v41 = vpack.c.bf16 %v2487_v25, %v2487_v25  ;;  %v1237_v54 = vrot.slane %v2487_v25, 6 }
0x1204   :  { %1168 = vrot.lane.b32.xlu0 %v1166_v41, %s2002_s21 }
0x1276   :  { %v1169_v28 = vpop.permute.xlu0 %1168 }
0x1277   :  { %1807 = vmatmul.mubr.msk.bf16.vlgmr.msra.gmra.mrb[24].mxu0 %vm184_vm1, %v1169_v28 }
0x1278   :  { %1338 = vmatpush1.bf16.msra.mxu0 %v2352_v19  ;;  %1369 = vmatprep.mubr.bf16.mxu0 %v2001_v2 }
0x1279   :  { %1339 = vmatprep.subr.bf16.mxu0 %v2379_v33 }
0x127c   :  { %1340 = vmatpush1.bf16.msra.mxu0 %v2390_v37 }
0x127d   :  { %1341 = vmatprep.subr.bf16.mxu0 %v2398_v39 }
0x1280   :  { %1342 = vmatpush1.bf16.msra.mxu0 %v2409_v44 }
0x1281   :  { %1343 = vmatprep.subr.bf16.mxu0 %v2416_v45 }
0x1284   :  { %1344 = vmatpush1.bf16.msra.mxu0 %v2425_v50 }
0x1285   :  { %1494 = vmatprep.subr.bf16.mxu0 %v2344_v15 }
0x134a   :  { %v1207_v30 = vpop.f32.mrb[24].mxu0 }
0x134b   :  { %v1215_v31 = vrot.slane %v1207_v30, 6  ;;  %v1209_v32 = vpop.f32.mrb[25].mxu0 }
0x134c   :  { %v1211_v34 = vpop.f32.mrb[26].mxu0  ;;  %v1224_v46 = vadd.f32 %v2480_v18, %v1209_v32 }
0x134d   :  { %v1217_v35 = vadd.f32 %v1215_v31, %v2468_v60  ;;  %v1212_v36 = vpop.f32.mrb[27].mxu0 }
0x134e   :  { %v1226_v51 = vrot.slane %v1224_v46, 6 }
0x134f   :  { %v1808_v40 = vmul.f32 -1.442695, %v1217_v35 }
0x1351   :  { %1935 = vpow2.f32 %v1808_v40 }
0x135b   :  { %v1936_v42 = vpop.eup %1935 }
0x135c   :  { %v1221_v43 = vadd.f32 1.0, %v1936_v42 }
0x135e   :  { %1937 = vrcp.f32 %v1221_v43 }
0x1368   :  { %v1938_v47 = vpop.eup %1937 }
0x1369   :  { %v1228_v48 = vmul.f32 %v1938_v47, %v1226_v51  ;;  %v1231_v53 = vsub.f32 1.0, %v1938_v47  ;;  %v1239_v56 = vmul.f32 %v1938_v47, %v1237_v54 }
0x136b   :  { %v1229_v49 = vadd.f32 %v1228_v48, %v2483_v8 }
0x136d   :  { %1939 = vtanh.f32 %v1229_v49 }
0x1377   :  { %v1940_v52 = vpop.eup %1939 }
0x1378   :  { %1233 = vrot.lane.b32.xlu1 %v1940_v52, %s2002_s21 }
0x13ea   :  { %v1234_v55 = vpop.permute.xlu1 %1233 }
0x13eb   :  { %v1236_v1 = vmul.f32 %v1234_v55, %v1231_v53 }
0x13ed   :  { %v2507_v57 = vadd.f32 %v1239_v56, %v1236_v1 }
0x13ef   :  { %v1247_v58 = vpack.c.bf16 %v2507_v57, %v2507_v57  ;;  %v1319_v11 = vrot.slane %v2507_v57, 6 }
0x13f1   :  { %v1249_v5 = vrot.slane %v1247_v58, 1 }
0x13f3   :  { %1250 = vrot.lane.b32.xlu0 %v1249_v5, %s2002_s21 }
0x1465   :  { %v1251_v59 = vpop.permute.xlu0 %1250 }
0x1466   :  { %1809 = vmatmul.mubr.msk.bf16.vlgmr.msra.gmra.mrb[20].mxu1 %vm184_vm1, %v1251_v59 }
0x1467   :  { %1420 = vmatpush1.bf16.msra.mxu1 %v2352_v19  ;;  %1451 = vmatprep.mubr.bf16.mxu1 %v2001_v2 }
0x1468   :  { %1421 = vmatprep.subr.bf16.mxu1 %v2379_v33 }
0x146b   :  { %1422 = vmatpush1.bf16.msra.mxu1 %v2390_v37 }
0x146c   :  { %1423 = vmatprep.subr.bf16.mxu1 %v2398_v39 }
0x146f   :  { %1424 = vmatpush1.bf16.msra.mxu1 %v2409_v44 }
0x1470   :  { %1425 = vmatprep.subr.bf16.mxu1 %v2416_v45 }
0x1473   :  { %1426 = vmatpush1.bf16.msra.mxu1 %v2425_v50 }
0x1474   :  { %1576 = vmatprep.subr.bf16.mxu1 %v2344_v15 }
0x1539   :  { %v1289_v6 = vpop.f32.mrb[20].mxu1 }
0x153a   :  { %v1297_v9 = vrot.slane %v1289_v6, 4  ;;  %v1291_v10 = vpop.f32.mrb[21].mxu1 }
0x153b   :  { %v1293_v27 = vpop.f32.mrb[22].mxu1  ;;  %v1306_v22 = vadd.f32 %v2480_v18, %v1291_v10 }
0x153c   :  { %v1299_v38 = vadd.f32 %v1297_v9, %v2468_v60  ;;  %v1294_v12 = vpop.f32.mrb[23].mxu1 }
0x153d   :  { %v1308_v63 = vrot.slane %v1306_v22, 4 }
0x153e   :  { %v1810_v29 = vmul.f32 -1.442695, %v1299_v38 }
0x1540   :  { %1941 = vpow2.f32 %v1810_v29 }
0x154a   :  { %v1942_v13 = vpop.eup %1941 }
0x154b   :  { %v1303_v61 = vadd.f32 1.0, %v1942_v13 }
0x154d   :  { %1943 = vrcp.f32 %v1303_v61 }
0x1557   :  { %v1944_v3 = vpop.eup %1943 }
0x1558   :  { %v1310_v4 = vmul.f32 %v1944_v3, %v1308_v63  ;;  %v1313_v7 = vsub.f32 1.0, %v1944_v3  ;;  %v1321_v14 = vmul.f32 %v1944_v3, %v1319_v11 }
0x155a   :  { %v1311_v17 = vadd.f32 %v1310_v4, %v2483_v8 }
0x155c   :  { %1945 = vtanh.f32 %v1311_v17 }
0x1566   :  { %v1946_v20 = vpop.eup %1945 }
0x1567   :  { %1315 = vrot.lane.b32.xlu1 %v1946_v20, %s2002_s21 }
0x15d9   :  { %v1316_v0 = vpop.permute.xlu1 %1315 }
0x15da   :  { %v1318_v26 = vmul.f32 %v1316_v0, %v1313_v7 }
0x15dc   :  { %v2527_v16 = vadd.f32 %v1321_v14, %v1318_v26 }
0x15de   :  { %v1329_v23 = vpack.c.bf16 %v2527_v16, %v2527_v16 }
0x15e0   :  { %v1331_v24 = vrot.slane %v1329_v23, 2 }
0x15e2   :  { %1332 = vrot.lane.b32.xlu0 %v1331_v24, %s2002_s21 }
0x1654   :  { %v1333_v41 = vpop.permute.xlu0 %1332 }
0x1655   :  { %1811 = vmatmul.mubr.msk.bf16.vlgmr.msra.gmra.mrb[28].mxu0 %vm184_vm1, %v1333_v41 }
0x1656   :  { %1495 = vmatpush1.bf16.msra.mxu0 %v2352_v19  ;;  %1526 = vmatprep.mubr.bf16.mxu0 %v2001_v2 }
0x1657   :  { %1496 = vmatprep.subr.bf16.mxu0 %v2379_v33 }
0x165a   :  { %1497 = vmatpush1.bf16.msra.mxu0 %v2390_v37 }
0x165b   :  { %1498 = vmatprep.subr.bf16.mxu0 %v2398_v39 }
0x165e   :  { %1499 = vmatpush1.bf16.msra.mxu0 %v2409_v44 }
0x165f   :  { %1500 = vmatprep.subr.bf16.mxu0 %v2416_v45 }
0x1662   :  { %1501 = vmatpush1.bf16.msra.mxu0 %v2425_v50 }
0x1663   :  { %1658 = vmatprep.subr.bf16.mxu0 %v2344_v15 }
0x1728   :  { %v1371_v28 = vpop.f32.mrb[28].mxu0 }
0x1729   :  { %v1379_v30 = vrot.slane %v1371_v28, 2  ;;  %v1373_v31 = vpop.f32.mrb[29].mxu0 }
0x172a   :  { %v1375_v32 = vpop.f32.mrb[30].mxu0  ;;  %v1388_v43 = vadd.f32 %v2480_v18, %v1373_v31 }
0x172b   :  { %v1381_v34 = vadd.f32 %v1379_v30, %v2468_v60  ;;  %v1376_v35 = vpop.f32.mrb[31].mxu0  ;;  %v1401_v60 = vrot.slane %v2527_v16, 6 }
0x172c   :  { %v1390_v46 = vrot.slane %v1388_v43, 2 }
0x172d   :  { %v1812_v36 = vmul.f32 -1.442695, %v1381_v34 }
0x172f   :  { %1947 = vpow2.f32 %v1812_v36 }
0x1739   :  { %v1948_v40 = vpop.eup %1947 }
0x173a   :  { %v1385_v42 = vadd.f32 1.0, %v1948_v40 }
0x173c   :  { %1949 = vrcp.f32 %v1385_v42 }
0x1746   :  { %v1950_v51 = vpop.eup %1949 }
0x1747   :  { %v1392_v47 = vmul.f32 %v1950_v51, %v1390_v46  ;;  %v1395_v49 = vsub.f32 1.0, %v1950_v51  ;;  %v1403_v53 = vmul.f32 %v1950_v51, %v1401_v60 }
0x1749   :  { %v1393_v48 = vadd.f32 %v1392_v47, %v2483_v8 }
0x174b   :  { %1951 = vtanh.f32 %v1393_v48 }
0x1755   :  { %v1952_v15 = vpop.eup %1951 }
0x1756   :  { %1397 = vrot.lane.b32.xlu1 %v1952_v15, %s2002_s21 }
0x17c8   :  { %v1398_v52 = vpop.permute.xlu1 %1397 }
0x17c9   :  { %v1400_v54 = vmul.f32 %v1398_v52, %v1395_v49 }
0x17cb   :  { %v2547_v55 = vadd.f32 %v1403_v53, %v1400_v54 }
0x17cd   :  { %v1411_v56 = vpack.c.bf16 %v2547_v55, %v2547_v55  ;;  %v1477_v3 = vrot.slane %v2547_v55, 6 }
0x17cf   :  { %v1413_v1 = vrot.slane %v1411_v56, 3 }
0x17d1   :  { %1414 = vrot.lane.b32.xlu0 %v1413_v1, %s2002_s21 }
0x1843   :  { %v1415_v58 = vpop.permute.xlu0 %1414 }
0x1844   :  { %1813 = vmatmul.mubr.msk.bf16.vlgmr.msra.gmra.mrb[24].mxu1 %vm184_vm1, %v1415_v58 }
0x1845   :  { %1577 = vmatpush1.bf16.msra.mxu1 %v2352_v19  ;;  %1608 = vmatprep.mubr.bf16.mxu1 %v2001_v2 }
0x1846   :  { %1578 = vmatprep.subr.bf16.mxu1 %v2379_v33 }
0x1849   :  { %1579 = vmatpush1.bf16.msra.mxu1 %v2390_v37 }
0x184a   :  { %1580 = vmatprep.subr.bf16.mxu1 %v2398_v39 }
0x184d   :  { %1581 = vmatpush1.bf16.msra.mxu1 %v2409_v44 }
0x184e   :  { %1582 = vmatprep.subr.bf16.mxu1 %v2416_v45 }
0x1851   :  { %1583 = vmatpush1.bf16.msra.mxu1 %v2425_v50 }
0x1917   :  { %v1453_v8 = vpop.f32.mrb[24].mxu1 }
0x1918   :  { %v1460_v5 = vadd.f32 %v1453_v8, %v2473_v21  ;;  %v1455_v59 = vpop.f32.mrb[25].mxu1 }
0x1919   :  { %v1457_v6 = vpop.f32.mrb[26].mxu1  ;;  %v1467_v12 = vadd.f32 %v2480_v18, %v1455_v59 }
0x191a   :  { %v1814_v9 = vmul.f32 -1.442695, %v1460_v5  ;;  %v1458_v10 = vpop.f32.mrb[27].mxu1 }
0x191c   :  { %1953 = vpow2.f32 %v1814_v9 }
0x1926   :  { %v1954_v27 = vpop.eup %1953 }
0x1927   :  { %v1464_v38 = vadd.f32 1.0, %v1954_v27 }
0x1929   :  { %1955 = vrcp.f32 %v1464_v38 }
0x1933   :  { %v1956_v29 = vpop.eup %1955 }
0x1934   :  { %v1468_v13 = vmul.f32 %v1956_v29, %v1467_v12  ;;  %v1471_v63 = vsub.f32 1.0, %v1956_v29  ;;  %v1479_v17 = vmul.f32 %v1956_v29, %v1477_v3 }
0x1936   :  { %v1469_v61 = vadd.f32 %v1468_v13, %v2475_v62 }
0x1938   :  { %1957 = vtanh.f32 %v1469_v61 }
0x1942   :  { %v1958_v22 = vpop.eup %1957 }
0x1943   :  { %1473 = vrot.lane.b32.xlu1 %v1958_v22, %s2002_s21 }
0x19b5   :  { %v1474_v4 = vpop.permute.xlu1 %1473 }
0x19b6   :  { %v1476_v20 = vmul.f32 %v1474_v4, %v1471_v63 }
0x19b8   :  { %v2566_v7 = vadd.f32 %v1479_v17, %v1476_v20 }
0x19ba   :  { %v1487_v11 = vpack.c.bf16 %v2566_v7, %v2566_v7  ;;  %v1558_v32 = vrot.slane %v2566_v7, 6 }
0x19bc   :  { %1489 = vrot.lane.b32.xlu0 %v1487_v11, %s2002_s21 }
0x1a2e   :  { %v1490_v0 = vpop.permute.xlu0 %1489 }
0x1a2f   :  { %1815 = vmatmul.mubr.msk.bf16.vlgmr.msra.gmra.mrb[32].mxu0 %vm184_vm1, %v1490_v0 }
0x1a30   :  { %1659 = vmatpush1.bf16.msra.mxu0 %v2352_v19  ;;  %1690 = vmatprep.mubr.bf16.mxu0 %v2001_v2 }
0x1a31   :  { %1660 = vmatprep.subr.bf16.mxu0 %v2379_v33 }
0x1a34   :  { %1661 = vmatpush1.bf16.msra.mxu0 %v2390_v37 }
0x1a35   :  { %1662 = vmatprep.subr.bf16.mxu0 %v2398_v39 }
0x1a38   :  { %1663 = vmatpush1.bf16.msra.mxu0 %v2409_v44 }
0x1a39   :  { %1664 = vmatprep.subr.bf16.mxu0 %v2416_v45 }
0x1a3c   :  { %1665 = vmatpush1.bf16.msra.mxu0 %v2425_v50 }
0x1b02   :  { %v1528_v14 = vpop.f32.mrb[32].mxu0 }
0x1b03   :  { %v1536_v26 = vrot.slane %v1528_v14, 6  ;;  %v1530_v23 = vpop.f32.mrb[33].mxu0 }
0x1b04   :  { %v1532_v24 = vpop.f32.mrb[34].mxu0  ;;  %v1545_v37 = vadd.f32 %v2480_v18, %v1530_v23 }
0x1b05   :  { %v1538_v19 = vadd.f32 %v1536_v26, %v2473_v21  ;;  %v1533_v41 = vpop.f32.mrb[35].mxu0 }
0x1b06   :  { %v1547_v39 = vrot.slane %v1545_v37, 6 }
0x1b07   :  { %v1816_v2 = vmul.f32 -1.442695, %v1538_v19 }
0x1b09   :  { %1959 = vpow2.f32 %v1816_v2 }
0x1b13   :  { %v1960_v33 = vpop.eup %1959 }
0x1b14   :  { %v1542_v28 = vadd.f32 1.0, %v1960_v33 }
0x1b16   :  { %1961 = vrcp.f32 %v1542_v28 }
0x1b20   :  { %v1962_v44 = vpop.eup %1961 }
0x1b21   :  { %v1549_v30 = vmul.f32 %v1962_v44, %v1547_v39  ;;  %v1552_v31 = vsub.f32 1.0, %v1962_v44  ;;  %v1560_v35 = vmul.f32 %v1962_v44, %v1558_v32 }
0x1b23   :  { %v1550_v45 = vadd.f32 %v1549_v30, %v2475_v62 }
0x1b25   :  { %1963 = vtanh.f32 %v1550_v45 }
0x1b2f   :  { %v1964_v50 = vpop.eup %1963 }
0x1b30   :  { %1554 = vrot.lane.b32.xlu1 %v1964_v50, %s2002_s21 }
0x1ba2   :  { %v1555_v34 = vpop.permute.xlu1 %1554 }
0x1ba3   :  { %v1557_v36 = vmul.f32 %v1555_v34, %v1552_v31 }
0x1ba5   :  { %v2585_v40 = vadd.f32 %v1560_v35, %v1557_v36 }
0x1ba7   :  { %v1568_v42 = vpack.c.bf16 %v2585_v40, %v2585_v40  ;;  %v1640_v9 = vrot.slane %v2585_v40, 6 }
0x1ba9   :  { %v1570_v43 = vrot.slane %v1568_v42, 1 }
0x1bab   :  { %1571 = vrot.lane.b32.xlu0 %v1570_v43, %s2002_s21 }
0x1c1d   :  { %v1572_v46 = vpop.permute.xlu0 %1571 }
0x1c1e   :  { %1817 = vmatmul.mubr.msk.bf16.vlgmr.msra.gmra.mrb[28].mxu1 %vm184_vm1, %v1572_v46 }
0x1cf1   :  { %v1610_v51 = vpop.f32.mrb[28].mxu1 }
0x1cf2   :  { %v1618_v47 = vrot.slane %v1610_v51, 4  ;;  %v1612_v48 = vpop.f32.mrb[29].mxu1 }
0x1cf3   :  { %v1614_v15 = vpop.f32.mrb[30].mxu1  ;;  %v1627_v56 = vadd.f32 %v2480_v18, %v1612_v48 }
0x1cf4   :  { %v1620_v49 = vadd.f32 %v1618_v47, %v2473_v21  ;;  %v1615_v60 = vpop.f32.mrb[31].mxu1 }
0x1cf5   :  { %v1629_v1 = vrot.slane %v1627_v56, 4 }
0x1cf6   :  { %v1818_v52 = vmul.f32 -1.442695, %v1620_v49 }
0x1cf8   :  { %1965 = vpow2.f32 %v1818_v52 }
0x1d02   :  { %v1966_v53 = vpop.eup %1965 }
0x1d03   :  { %v1624_v54 = vadd.f32 1.0, %v1966_v53 }
0x1d05   :  { %1967 = vrcp.f32 %v1624_v54 }
0x1d0f   :  { %v1968_v58 = vpop.eup %1967 }
0x1d10   :  { %v1631_v8 = vmul.f32 %v1968_v58, %v1629_v1  ;;  %v1634_v6 = vsub.f32 1.0, %v1968_v58  ;;  %v1642_v27 = vmul.f32 %v1968_v58, %v1640_v9 }
0x1d12   :  { %v1632_v5 = vadd.f32 %v1631_v8, %v2475_v62 }
0x1d14   :  { %1969 = vtanh.f32 %v1632_v5 }
0x1d1e   :  { %v1970_v59 = vpop.eup %1969 }
0x1d1f   :  { %1636 = vrot.lane.b32.xlu1 %v1970_v59, %s2002_s21 }
0x1d91   :  { %v1637_v10 = vpop.permute.xlu1 %1636 }
0x1d92   :  { %v1639_v38 = vmul.f32 %v1637_v10, %v1634_v6 }
0x1d94   :  { %v1643_v12 = vadd.f32 %v1642_v27, %v1639_v38 }
0x1d96   :  { %v1650_v29 = vpack.c.bf16 %v1643_v12, %v1643_v12  ;;  %v1722_v23 = vrot.slane %v1643_v12, 6 }
0x1d98   :  { %v1652_v13 = vrot.slane %v1650_v29, 2 }
0x1d9a   :  { %1653 = vrot.lane.b32.xlu0 %v1652_v13, %s2002_s21 }
0x1d9e   :  { %1161 = vrot.lane.b32.xlu0 %v2487_v25, %s2002_s21 }
0x1da2   :  { %1324 = vrot.lane.b32.xlu0 %v2527_v16, %s2002_s21 }
0x1da6   :  { %1482 = vrot.lane.b32.xlu0 %v2566_v7, %s2002_s21 }
0x1daa   :  { %1645 = vrot.lane.b32.xlu0 %v1643_v12, %s2002_s21 }
0x1e0c   :  { %v1654_v61 = vpop.permute.xlu0 %1653 }
0x1e0d   :  { %1819 = vmatmul.mubr.msk.bf16.vlgmr.msra.gmra.mrb[36].mxu0 %vm184_vm1, %v1654_v61 }
0x1e10   :  { %v1162_v22 = vpop.permute.xlu0 %1161 }
0x1e11   :  { %1164 = vst.msk [vmem:[#allocation3] sm:$0x3] %vm256_vm2, %v1162_v22 }
0x1e12   :  { %1165 = vst.msk [vmem:[#allocation3 + $0xe] sm:$0x3] %vm258_vm3, %v1162_v22 }
0x1e14   :  { %v1325_v63 = vpop.permute.xlu0 %1324 }
0x1e15   :  { %1327 = vst.msk [vmem:[#allocation3] sm:$0x30] %vm423_vm4, %v1325_v63 }
0x1e16   :  { %1328 = vst.msk [vmem:[#allocation3 + $0x6] sm:$0x30] %vm425_vm5, %v1325_v63 }
0x1ee0   :  { %v1692_v25 = vpop.f32.mrb[36].mxu0 }
0x1ee1   :  { %v1700_v16 = vrot.slane %v1692_v25, 2  ;;  %v1694_v3 = vpop.f32.mrb[37].mxu0 }
0x1ee2   :  { %v1696_v4 = vpop.f32.mrb[38].mxu0  ;;  %v1709_v14 = vadd.f32 %v2480_v18, %v1694_v3 }
0x1ee3   :  { %v1702_v17 = vadd.f32 %v1700_v16, %v2473_v21  ;;  %v1697_v20 = vpop.f32.mrb[39].mxu0  ;;  %v1483_v21 = vpop.permute.xlu0 %1482 }
0x1ee4   :  { %v1711_v26 = vrot.slane %v1709_v14, 2 }
0x1ee5   :  { %v1820_v7 = vmul.f32 -1.442695, %v1702_v17 }
0x1ee7   :  { %1971 = vpow2.f32 %v1820_v7 }
0x1ef1   :  { %v1972_v11 = vpop.eup %1971 }
0x1ef2   :  { %v1706_v0 = vadd.f32 1.0, %v1972_v11 }
0x1ef4   :  { %1973 = vrcp.f32 %v1706_v0 }
0x1efe   :  { %v1974_v24 = vpop.eup %1973 }
0x1eff   :  { %v1713_v19 = vmul.f32 %v1974_v24, %v1711_v26  ;;  %v1724_v41 = vmul.f32 %v1974_v24, %v1722_v23  ;;  %v1716_v18 = vsub.f32 1.0, %v1974_v24 }
0x1f01   :  { %v1714_v2 = vadd.f32 %v1713_v19, %v2475_v62  ;;  %v1646_v62 = vpop.permute.xlu0 %1645 }
0x1f03   :  { %1975 = vtanh.f32 %v1714_v2 }
0x1f0d   :  { %v1976_v33 = vpop.eup %1975 }
0x1f0e   :  { %1718 = vrot.lane.b32.xlu1 %v1976_v33, %s2002_s21 }
0x1f12   :  { %1242 = vrot.lane.b32.xlu1 %v2507_v57, %s2002_s21 }
0x1f16   :  { %1406 = vrot.lane.b32.xlu1 %v2547_v55, %s2002_s21 }
0x1f1a   :  { %1563 = vrot.lane.b32.xlu1 %v2585_v40, %s2002_s21 }
0x1f80   :  { %v1719_v28 = vpop.permute.xlu1 %1718 }
0x1f81   :  { %v1721_v37 = vmul.f32 %v1719_v28, %v1716_v18 }
0x1f83   :  { %v1725_v39 = vadd.f32 %v1724_v41, %v1721_v37 }
0x1f84   :  { %v1243_v44 = vpop.permute.xlu1 %1242 }
0x1f85   :  { %1245 = vst.msk [vmem:[#allocation3] sm:$0xc] %vm339_vm6, %v1243_v44  ;;  %1727 = vrot.lane.b32.xlu1 %v1725_v39, %s2002_s21  ;;  %s1737_s21 = sshll.u32 %s2003_s9, 4  ;;  %s1738_s21 = int_to_ptr.vmem [resolvable:$true] %s1737_s21 }
0x1f86   :  { %1246 = vst.msk [vmem:[#allocation3 + $0xa] sm:$0xc] %vm341_vm7, %v1243_v44  ;;  %s1977_s23 = scalar_lea.vmem %s1738_s21, 256  ;;  %p1982_p1 = scmp.lt.s32.totalorder %s1738_s21, %s1738_s21 }
0x1f87   :  { %1648 = vst.msk [vmem:[#allocation3 + $0x8] sm:$0x30] %vm423_vm4, %v1646_v62  ;;  %p1978_p0 = scmp.ne.s32.totalorder %s1738_s21, %s1977_s23  ;;  %p1983_p2 = scmp.lt.s32.totalorder %s1977_s23, %s1977_s23 }
0x1f88   :  { %1649 = vst.msk [vmem:[#allocation3 - $0x2] sm:$0x30] %vm425_vm5, %v1646_v62  ;;  %v1407_v57 = vpop.permute.xlu1 %1406 }
0x1f89   :  { %1409 = vst.msk [vmem:[#allocation3] sm:$0xc0] %vm507_vm8, %v1407_v57  ;;  %p1984_p3 = por %p1983_p2, %p1982_p1 }
0x1f8a   :  { %1410 = vst.msk [vmem:[#allocation3 + $0x2] sm:$0xc0] %vm509_vm9, %v1407_v57 }
0x1f8b   :  { %1485 = vst.msk [vmem:[#allocation3 + $0x8] sm:$0x3] %vm256_vm2, %v1483_v21  ;;  %p1985_p4 = pnand %p1984_p3, %p1978_p0 }
0x1f8c   :  { %1486 = vst.msk [vmem:[#allocation3 + $0x6] sm:$0x3] %vm258_vm3, %v1483_v21  ;;  %v1564_v55 = vpop.permute.xlu1 %1563 }
0x1f8d   :  { %1566 = vst.msk [vmem:[#allocation3 + $0x8] sm:$0xc] %vm339_vm6, %v1564_v55 }
0x1f8e   :  { %1567 = vst.msk [vmem:[#allocation3 + $0x2] sm:$0xc] %vm341_vm7, %v1564_v55 }
0x1ff7   :  { %v1728_v30 = vpop.permute.xlu1 %1727 }
0x1ff8   :  { %1730 = vst.msk [vmem:[#allocation3 + $0x8] sm:$0xc0] %vm507_vm8, %v1728_v30 }
0x1ff9   :  { %1731 = vst.msk [vmem:[#allocation3 - $0x6] sm:$0xc0] %vm509_vm9, %v1728_v30 }
0x1ffa   :  { %1988 = shalt.err (!%p1985_p4)
}
0x1ffb   :  { %s1989_s26 = scalar_lea.hbm %s2654_s10, 256 }
0x1ffc   :  { %p1990_p5 = scmp.ne.s32.totalorder %s2654_s10, %s1989_s26  ;;  %p1993_p6 = scmp.lt.u32.totalorder %s1989_s26, %s2654_s10 }
0x1ffe   :  { %p1995_p7 = pnand %p1993_p6, %p1990_p5 }
0x2000   :  { %1998 = shalt.err (!%p1995_p7)
}
0x2001   :  { %s2004_s11 = smov 128   ;;  %s2005_s12 = smov 8  }
0x2002   :  { %1743 = dma.vmem_to_hbm [thread:$0]  %s1738_s21, 256, %s2654_s10, [#allocation4], %s2004_s11, %s2004_s11, %s2005_s12  }
0x2003   :  { %1999 = dma.done.wait [#allocation4], 256  }
0x2004   :  { %2000 = vsyncadd [#allocation4], 4294967040 }
0x2005   :  { %1747 = vsyncpa [#allocation4], 1 }

</bundles_post_ra>
